<compile_context>
chip_gen: v6e
topology: v6e:2x2x1
jax: 0.10.0
libtpu: 0.0.40
codegen_flags: <defaults>
</compile_context>

<pallas_src>
import functools

import numpy as np
import jax
import jax.numpy as jnp
from jax.experimental import pallas as pl
from jax.experimental.pallas import tpu as pltpu

NEG_SLOPE = 0.01            # nn.LeakyReLU default
BN_EPS = 1e-5               # nn.BatchNorm2d default
ACT_DTYPE = jnp.bfloat16    # inter-layer activation / weight dtype (f32 accumulation)

# 3x3 tap offsets, row-major; index 4 is the un-shifted (0, 0) tap.
_TAPS = tuple((dy, dx) for dy in (-1, 0, 1) for dx in (-1, 0, 1))

# Sub-pixel decomposition of ConvTranspose2d(kernel=4, stride=2, padding=1):
# output row 2*m + r pulls from input row m + dy through kernel row ky.
_PHASE_TAPS = {0: ((0, 1), (-1, 3)),    # r = 0: (dy, ky) pairs
               1: ((1, 0), (0, 2))}     # r = 1: (dy, ky) pairs


def _leaky_relu(x):
    return jnp.where(x > 0, x, NEG_SLOPE * x)


def _shifted_taps(x, off, width, wp):
    """The nine 3x3-shifted windows of a flattened, zero-haloed image.

    x: (C, >= 2*off + width) value whose image content starts at column `off`
    relative to the window origin.  Returns nine (C, width) slices; slice t at
    column j equals the image shifted by tap (dy, dx) = _TAPS[t].  Pure static
    lane-offset slices: no reshape, no roll, no scatter.
    """
    return [x[:, off + dy * wp + dx: off + dy * wp + dx + width]
            for dy, dx in _TAPS]


# ----------------------------------------------------------------------------
# Pallas kernels
# ----------------------------------------------------------------------------
def _project_kernel(x_ref, w_ref, s_ref, b_ref, m_ref, o_ref, *, wp, off, width):
    """Fused 3x3 conv + folded BN + LeakyReLU as one (Cout, 9*Cin) MXU matmul."""
    x = x_ref[0]                                                   # (Cin, Ls) bf16
    patch = jnp.concatenate(_shifted_taps(x, off, width, wp), axis=0)   # (9Cin, W)
    acc = jnp.dot(w_ref[...], patch, preferred_element_type=jnp.float32)
    y = _leaky_relu(acc * s_ref[...] + b_ref[...]) * m_ref[...]    # zero halo border
    o_ref[0] = y.astype(o_ref.dtype)                               # (Cout, width)


def _res_up_kernel(x_ref, wr_ref, sr_ref, br_ref, wu_ref, su_ref, bu_ref,
                   m_ref, o_ref, *, wp, off2, le, lv):
    """One fused decoder layer: ResBlock + upscale ReduceBlock.

    ResBlock    : r = LeakyReLU(BN(conv3x3(x))) + x  (computed on an extended
                  window of width le = lv + 2*off2 so the next conv's taps are
                  again plain static slices of r).
    ReduceBlock : ConvTranspose2d(4,2,1) + BN + LeakyReLU as ONE phase-major
                  (4*Cout, 9*Cin) matmul on the 9-tap patch of r.
    """
    x = x_ref[0]                                                   # (C, Ls) bf16

    # --- ResBlock -----------------------------------------------------------
    taps1 = _shifted_taps(x, off2, le, wp)
    patch1 = jnp.concatenate(taps1, axis=0)                        # (9C, le)
    acc1 = jnp.dot(wr_ref[...], patch1, preferred_element_type=jnp.float32)
    y = _leaky_relu(acc1 * sr_ref[...] + br_ref[...]) * m_ref[...]
    # residual add AFTER the activation (matches PyTorch ResBlock); taps1[4]
    # is the un-shifted x window, zero outside the true image -> r is zero
    # everywhere the transposed conv must see "out of range / padding".
    r = (y + taps1[4].astype(jnp.float32)).astype(ACT_DTYPE)       # (C, le)

    # --- 4-phase transposed conv (sub-pixel decomposition) -------------------
    patch2 = jnp.concatenate(_shifted_taps(r, off2, lv, wp), axis=0)    # (9C, lv)
    acc2 = jnp.dot(wu_ref[...], patch2, preferred_element_type=jnp.float32)
    z = _leaky_relu(acc2 * su_ref[...] + bu_ref[...])
    o_ref[0] = z.astype(o_ref.dtype)                               # (4*Cout, lv)


# ----------------------------------------------------------------------------
# Host-side helpers (storage layout, masks, glue, pallas_call wrappers)
# ----------------------------------------------------------------------------
def _vmem_limit(*arrays, work_elems=0):
    """Explicit scoped-VMEM limit from actual block sizes (+ double buffering)."""
    block_bytes = sum(int(a.size) * a.dtype.itemsize for a in arrays)
    need = 2 * block_bytes + 4 * int(work_elems) + (4 << 20)
    return int(min(max(need, 16 << 20), 48 << 20))


def _interior_mask(h, w, margin):
    """(1, margin + (h+2)*(w+2) + margin) f32 mask: 1 on the un-padded image."""
    m = np.zeros((h + 2, w + 2), np.float32)
    m[1:-1, 1:-1] = 1.0
    m = m.reshape(-1)
    if margin:
        z = np.zeros((margin,), np.float32)
        m = np.concatenate([z, m, z])
    return jnp.asarray(m[None, :])


def _to_storage(img, margin):
    """(B, C, H, W) -> (B, C, (H+2)*(W+2) + 2*margin) bf16 padded-flat storage."""
    b, c, h, w = img.shape
    xp = jnp.pad(img, ((0, 0), (0, 0), (1, 1), (1, 1)))
    flat = xp.reshape(b, c, (h + 2) * (w + 2))
    flat = jnp.pad(flat, ((0, 0), (0, 0), (margin, margin)))
    return flat.astype(ACT_DTYPE)


def _interleave_phases(phases, cout, h, w):
    """(B, 4*Cout, (h+2)*(w+2)) phase-major conv-transpose output -> (B, Cout, 2h, 2w)."""
    b = phases.shape[0]
    hp, wp = h + 2, w + 2
    p = phases.reshape(b, 2, 2, cout, hp, wp)[:, :, :, :, 1:h + 1, 1:w + 1]
    p = p.transpose(0, 3, 4, 1, 5, 2)              # (B, Cout, h, ry, w, rx)
    return p.reshape(b, cout, 2 * h, 2 * w)


def _project_call(x_s, w, scale, bias, mask, *, wp, lv, off):
    b, cin, ls = x_s.shape
    cout = w.shape[0]
    kern = functools.partial(_project_kernel, wp=wp, off=off, width=lv)
    return pl.pallas_call(
        kern,
        out_shape=jax.ShapeDtypeStruct((b, cout, lv), ACT_DTYPE),
        grid=(b,),
        in_specs=[
            pl.BlockSpec((1, cin, ls), lambda i: (i, 0, 0)),
            pl.BlockSpec(w.shape, lambda i: (0, 0)),
            pl.BlockSpec(scale.shape, lambda i: (0, 0)),
            pl.BlockSpec(bias.shape, lambda i: (0, 0)),
            pl.BlockSpec(mask.shape, lambda i: (0, 0)),
        ],
        out_specs=pl.BlockSpec((1, cout, lv), lambda i: (i, 0, 0)),
        compiler_params=pltpu.CompilerParams(
            dimension_semantics=("parallel",),
            vmem_limit_bytes=_vmem_limit(
                x_s, w, scale, bias, mask,
                work_elems=(9 * cin + 2 * cout) * lv)),
    )(x_s, w, scale, bias, mask)


def _layer_call(x_s, layer, mask, *, wp, lv, le, off2):
    b, cin, ls = x_s.shape
    cout4 = layer["up_w"].shape[0]
    kern = functools.partial(_res_up_kernel, wp=wp, off2=off2, le=le, lv=lv)
    work = 9 * cin * (le + lv) + 2 * cin * le + 2 * cout4 * lv
    return pl.pallas_call(
        kern,
        out_shape=jax.ShapeDtypeStruct((b, cout4, lv), ACT_DTYPE),
        grid=(b,),
        in_specs=[
            pl.BlockSpec((1, cin, ls), lambda i: (i, 0, 0)),
            pl.BlockSpec(layer["res_w"].shape, lambda i: (0, 0)),
            pl.BlockSpec(layer["res_scale"].shape, lambda i: (0, 0)),
            pl.BlockSpec(layer["res_bias"].shape, lambda i: (0, 0)),
            pl.BlockSpec(layer["up_w"].shape, lambda i: (0, 0)),
            pl.BlockSpec(layer["up_scale"].shape, lambda i: (0, 0)),
            pl.BlockSpec(layer["up_bias"].shape, lambda i: (0, 0)),
            pl.BlockSpec(mask.shape, lambda i: (0, 0)),
        ],
        out_specs=pl.BlockSpec((1, cout4, lv), lambda i: (i, 0, 0)),
        compiler_params=pltpu.CompilerParams(
            dimension_semantics=("parallel",),
            vmem_limit_bytes=_vmem_limit(
                x_s, layer["res_w"], layer["up_w"], mask, work_elems=work)),
    )(x_s, layer["res_w"], layer["res_scale"], layer["res_bias"],
      layer["up_w"], layer["up_scale"], layer["up_bias"], mask)


# ----------------------------------------------------------------------------
# Parameter construction (deterministic, matches module __init__ shapes)
# ----------------------------------------------------------------------------
def _fold_bn(gamma, beta, mean, var):
    scale = gamma / jnp.sqrt(var + BN_EPS)
    bias = beta - mean * scale
    return scale[:, None].astype(jnp.float32), bias[:, None].astype(jnp.float32)


def _make_bn(key, c):
    k1, k2, k3, k4 = jax.random.split(key, 4)
    gamma = 1.0 + 0.1 * jax.random.normal(k1, (c,), jnp.float32)
    beta = 0.1 * jax.random.normal(k2, (c,), jnp.float32)
    mean = 0.1 * jax.random.normal(k3, (c,), jnp.float32)
    var = 0.5 + jax.random.uniform(k4, (c,), jnp.float32)
    return _fold_bn(gamma, beta, mean, var)


def _pack_conv3x3(w_pt):
    """PyTorch Conv2d weight (Cout, Cin, 3, 3) -> (Cout, 9*Cin); column block
    t = ky*3 + kx holds w[:, :, ky, kx], matching the _TAPS patch ordering."""
    cout, cin = w_pt.shape[0], w_pt.shape[1]
    return jnp.transpose(w_pt, (0, 2, 3, 1)).reshape(cout, 9 * cin).astype(ACT_DTYPE)


def _pack_convtranspose(w_t):
    """PyTorch ConvTranspose2d(4,2,1) weight (Cin, Cout, 4, 4) -> phase-major
    (4*Cout, 9*Cin) matrix for the 4-phase sub-pixel decomposition."""
    w_np = np.asarray(w_t, np.float32)
    cin, cout = w_np.shape[0], w_np.shape[1]
    packed = np.zeros((2, 2, cout, 3, 3, cin), np.float32)
    for ry in (0, 1):
        for rx in (0, 1):
            for dy, ky in _PHASE_TAPS[ry]:
                for dx, kx in _PHASE_TAPS[rx]:
                    packed[ry, rx, :, dy + 1, dx + 1, :] = w_np[:, :, ky, kx].T
    return jnp.asarray(packed.reshape(4 * cout, 9 * cin), ACT_DTYPE)


def make_params(key, n_channels_latent, n_filters, n_layers):
    params = {}
    n_start = n_filters << n_layers

    key, kw, kbn = jax.random.split(key, 3)
    w_pt = 0.1 * jax.random.normal(kw, (n_start, n_channels_latent, 3, 3), jnp.float32)
    s, b = _make_bn(kbn, n_start)
    params["project"] = {"w": _pack_conv3x3(w_pt), "w_raw": w_pt, "scale": s, "bias": b}

    layers = []
    for i in range(n_layers, 0, -1):
        cin, cout = n_filters << i, n_filters << (i - 1)
        key, k1, k2, k3, k4 = jax.random.split(key, 5)
        rw_pt = 0.1 * jax.random.normal(k1, (cin, cin, 3, 3), jnp.float32)
        rs, rb = _make_bn(k2, cin)
        tw_pt = 0.1 * jax.random.normal(k3, (cin, cout, 4, 4), jnp.float32)
        ts, tb = _make_bn(k4, cout)
        layers.append({
            "res_w": _pack_conv3x3(rw_pt), "res_w_raw": rw_pt,
            "res_scale": rs, "res_bias": rb,
            "up_w": _pack_convtranspose(tw_pt), "up_w_raw": tw_pt,
            "up_scale": jnp.tile(ts, (4, 1)), "up_bias": jnp.tile(tb, (4, 1)),
        })
    params["layers"] = layers
    return params


# ----------------------------------------------------------------------------
# Forward pass (matches CNNDecoder.forward, NCHW in / NCHW out)
# ----------------------------------------------------------------------------
def cnn_decoder_forward(x_nchw, params):
    b, _, h, w = x_nchw.shape

    # project_layer: Conv2d(3x3, same, no bias) + BN + LeakyReLU
    wp, lv = w + 2, (h + 2) * (w + 2)
    off = wp + 1
    p = params["project"]
    y = _project_call(_to_storage(x_nchw, off), p["w"], p["scale"], p["bias"],
                      _interior_mask(h, w, 0), wp=wp, lv=lv, off=off)

    if not params["layers"]:
        return y.reshape(b, -1, h + 2, w + 2)[:, :, 1:-1, 1:-1].astype(jnp.float32)

    img = None
    for li, layer in enumerate(params["layers"]):
        cout = layer["up_w"].shape[0] // 4
        wp, lv = w + 2, (h + 2) * (w + 2)
        off2 = wp + 1
        le = lv + 2 * off2
        if li == 0:
            # project output is already padded-flat with zeroed halo borders.
            x_s = jnp.pad(y, ((0, 0), (0, 0), (2 * off2, 2 * off2)))
        else:
            x_s = _to_storage(img, 2 * off2)
        phases = _layer_call(x_s, layer, _interior_mask(h, w, off2),
                             wp=wp, lv=lv, le=le, off2=off2)
        img = _interleave_phases(phases, cout, h, w)       # (B, cout, 2h, 2w) bf16
        h, w = 2 * h, 2 * w
    return img.astype(jnp.float32)


# ----------------------------------------------------------------------------
# Pure-JAX (XLA) reference for numerical verification
# ----------------------------------------------------------------------------
def _reference_forward(x, params):
    def bn_lrelu(v, scale, bias):
        v = v * scale.reshape(1, -1, 1, 1) + bias.reshape(1, -1, 1, 1)
        return jnp.where(v > 0, v, NEG_SLOPE * v)

    def conv3x3(v, wgt):
        return jax.lax.conv_general_dilated(
            v, wgt, (1, 1), "SAME", dimension_numbers=("NCHW", "OIHW", "NCHW"))

    def conv_t421(v, w_t):
        wgt = jnp.flip(w_t, (2, 3)).transpose(1, 0, 2, 3)
        return jax.lax.conv_general_dilated(
            v, wgt, (1, 1), [(2, 2), (2, 2)], lhs_dilation=(2, 2),
            dimension_numbers=("NCHW", "OIHW", "NCHW"))

    p = params["project"]
    y = bn_lrelu(conv3x3(x, p["w_raw"]), p["scale"], p["bias"])
    for layer in params["layers"]:
        cout = layer["up_w"].shape[0] // 4
        y = bn_lrelu(conv3x3(y, layer["res_w_raw"]),
                     layer["res_scale"], layer["res_bias"]) + y
        y = bn_lrelu(conv_t421(y, layer["up_w_raw"]),
                     layer["up_scale"][:cout], layer["up_bias"][:cout])
    return y


if __name__ == "__main__":
    n_channels_latent, n_filters, n_layers = 4, 4, 2
    batch, spatial = 2, 8

    key = jax.random.PRNGKey(0)
    kx, kp = jax.random.split(key)
    x = jax.random.normal(kx, (batch, n_channels_latent, spatial, spatial),
                          jnp.float32)
    params = make_params(kp, n_channels_latent, n_filters, n_layers)

    fwd = jax.jit(cnn_decoder_forward)
    y = jax.block_until_ready(fwd(x, params))

    expected = (batch, n_filters, spatial << n_layers, spatial << n_layers)
    assert y.shape == expected, (y.shape, expected)
    assert bool(jnp.all(jnp.isfinite(y)))

    # Numerical check against an XLA reference (loose tolerance: the kernel
    # path keeps weights/activations in bf16, the reference is full f32).
    ref = _reference_forward(x, params)
    err = float(jnp.max(jnp.abs(y - ref)))
    tol = 0.06 * float(jnp.max(jnp.abs(ref))) + 0.05
    assert err <= tol, (err, tol)

    print("KERNEL_OK")
</pallas_src>

<mosaic_0001>
module attributes {stable_mosaic.version = 11 : i64} {
  func.func @_project_kernel(%arg0: i32, %arg1: memref<1x4x122xbf16, #tpu.memory_space<vmem>>, %arg2: memref<16x36xbf16, #tpu.memory_space<vmem>>, %arg3: memref<16x1xf32, #tpu.memory_space<vmem>>, %arg4: memref<16x1xf32, #tpu.memory_space<vmem>>, %arg5: memref<1x100xf32, #tpu.memory_space<vmem>>, %arg6: memref<1x16x100xbf16, #tpu.memory_space<vmem>>) attributes {dimension_semantics = [#tpu.dimension_semantics<parallel>], iteration_bounds = array<i64: 2>, scalar_prefetch = 0 : i64, scratch_operands = 0 : i64, tpu.core_type = #tpu.core_type<tc>, window_params = [{transform_indices = @transform_0, window_bounds = array<i64: 1, 4, 122>}, {pipeline_mode = #tpu.pipeline_mode<synchronous>, transform_indices = @transform_1, window_bounds = array<i64: 16, 36>}, {pipeline_mode = #tpu.pipeline_mode<synchronous>, transform_indices = @transform_2, window_bounds = array<i64: 16, 1>}, {pipeline_mode = #tpu.pipeline_mode<synchronous>, transform_indices = @transform_3, window_bounds = array<i64: 16, 1>}, {pipeline_mode = #tpu.pipeline_mode<synchronous>, transform_indices = @transform_4, window_bounds = array<i64: 1, 100>}, {transform_indices = @transform_5, window_bounds = array<i64: 1, 16, 100>}]} {
    %c0 = arith.constant 0 : index
    %c0_0 = arith.constant 0 : index
    %c0_1 = arith.constant 0 : index
    %0 = vector.load %arg1[%c0, %c0_0, %c0_1] : memref<1x4x122xbf16, #tpu.memory_space<vmem>>, vector<1x4x122xbf16>
    %1 = vector.shape_cast %0 : vector<1x4x122xbf16> to vector<4x122xbf16>
    %2 = vector.extract_strided_slice %1 {offsets = [0, 0], sizes = [4, 100], strides = [1, 1]} : vector<4x122xbf16> to vector<4x100xbf16>
    %3 = vector.extract_strided_slice %1 {offsets = [0, 1], sizes = [4, 100], strides = [1, 1]} : vector<4x122xbf16> to vector<4x100xbf16>
    %4 = vector.extract_strided_slice %1 {offsets = [0, 2], sizes = [4, 100], strides = [1, 1]} : vector<4x122xbf16> to vector<4x100xbf16>
    %5 = vector.extract_strided_slice %1 {offsets = [0, 10], sizes = [4, 100], strides = [1, 1]} : vector<4x122xbf16> to vector<4x100xbf16>
    %6 = vector.extract_strided_slice %1 {offsets = [0, 11], sizes = [4, 100], strides = [1, 1]} : vector<4x122xbf16> to vector<4x100xbf16>
    %7 = vector.extract_strided_slice %1 {offsets = [0, 12], sizes = [4, 100], strides = [1, 1]} : vector<4x122xbf16> to vector<4x100xbf16>
    %8 = vector.extract_strided_slice %1 {offsets = [0, 20], sizes = [4, 100], strides = [1, 1]} : vector<4x122xbf16> to vector<4x100xbf16>
    %9 = vector.extract_strided_slice %1 {offsets = [0, 21], sizes = [4, 100], strides = [1, 1]} : vector<4x122xbf16> to vector<4x100xbf16>
    %10 = vector.extract_strided_slice %1 {offsets = [0, 22], sizes = [4, 100], strides = [1, 1]} : vector<4x122xbf16> to vector<4x100xbf16>
    %11 = tpu.concatenate %2, %3, %4, %5, %6, %7, %8, %9, %10 in 0 : vector<4x100xbf16>, vector<4x100xbf16>, vector<4x100xbf16>, vector<4x100xbf16>, vector<4x100xbf16>, vector<4x100xbf16>, vector<4x100xbf16>, vector<4x100xbf16>, vector<4x100xbf16> -> vector<36x100xbf16>
    %c0_2 = arith.constant 0 : index
    %c0_3 = arith.constant 0 : index
    %12 = vector.load %arg2[%c0_2, %c0_3] : memref<16x36xbf16, #tpu.memory_space<vmem>>, vector<16x36xbf16>
    %cst = arith.constant dense<0.000000e+00> : vector<16x100xf32>
    %13 = tpu.matmul %12, %11, %cst {dimension_numbers = #tpu.dot_dimension_numbers<[1], [0], [0], [1], [0, 0, 1, 1], [], []>} : vector<16x36xbf16>, vector<36x100xbf16>, vector<16x100xf32> -> vector<16x100xf32>
    %c0_4 = arith.constant 0 : index
    %c0_5 = arith.constant 0 : index
    %14 = vector.load %arg3[%c0_4, %c0_5] : memref<16x1xf32, #tpu.memory_space<vmem>>, vector<16x1xf32>
    %15 = vector.broadcast %14 : vector<16x1xf32> to vector<16x100xf32>
    %16 = arith.mulf %13, %15 : vector<16x100xf32>
    %c0_6 = arith.constant 0 : index
    %c0_7 = arith.constant 0 : index
    %17 = vector.load %arg4[%c0_6, %c0_7] : memref<16x1xf32, #tpu.memory_space<vmem>>, vector<16x1xf32>
    %18 = vector.broadcast %17 : vector<16x1xf32> to vector<16x100xf32>
    %19 = arith.addf %16, %18 : vector<16x100xf32>
    %cst_8 = arith.constant 0.000000e+00 : f32
    %20 = vector.broadcast %cst_8 : f32 to vector<16x100xf32>
    %21 = arith.cmpf ogt, %19, %20 : vector<16x100xf32>
    %cst_9 = arith.constant 0.00999999977 : f32
    %22 = vector.broadcast %cst_9 : f32 to vector<16x100xf32>
    %23 = arith.mulf %22, %19 : vector<16x100xf32>
    %24 = arith.select %21, %19, %23 : vector<16x100xi1>, vector<16x100xf32>
    %c0_10 = arith.constant 0 : index
    %c0_11 = arith.constant 0 : index
    %25 = vector.load %arg5[%c0_10, %c0_11] : memref<1x100xf32, #tpu.memory_space<vmem>>, vector<1x100xf32>
    %26 = vector.broadcast %25 : vector<1x100xf32> to vector<16x100xf32>
    %27 = arith.mulf %24, %26 : vector<16x100xf32>
    %28 = arith.truncf %27 : vector<16x100xf32> to vector<16x100xbf16>
    %c0_12 = arith.constant 0 : index
    %c0_13 = arith.constant 0 : index
    %c0_14 = arith.constant 0 : index
    %29 = vector.load %arg6[%c0_12, %c0_13, %c0_14] : memref<1x16x100xbf16, #tpu.memory_space<vmem>>, vector<1x16x100xbf16>
    %30 = vector.shape_cast %29 : vector<1x16x100xbf16> to vector<16x100xbf16>
    %31 = vector.shape_cast %28 : vector<16x100xbf16> to vector<1x16x100xbf16>
    tpu.vector_store %arg6[%c0_12, %c0_13, %c0_14], %31 {strides = array<i32>} : memref<1x16x100xbf16, #tpu.memory_space<vmem>>, vector<1x16x100xbf16>,
    return
  }
  func.func @transform_0(%arg0: i32) -> (i32, i32, i32) {
    %c0_i32 = arith.constant 0 : i32
    %c0_i32_0 = arith.constant 0 : i32
    %c0_i32_1 = arith.constant 0 : i32
    return %arg0, %c0_i32, %c0_i32_0 : i32, i32, i32
  }
  func.func @transform_1(%arg0: i32) -> (i32, i32) {
    %c0_i32 = arith.constant 0 : i32
    %c0_i32_0 = arith.constant 0 : i32
    %c0_i32_1 = arith.constant 0 : i32
    return %c0_i32, %c0_i32_0 : i32, i32
  }
  func.func @transform_2(%arg0: i32) -> (i32, i32) {
    %c0_i32 = arith.constant 0 : i32
    %c0_i32_0 = arith.constant 0 : i32
    %c0_i32_1 = arith.constant 0 : i32
    return %c0_i32, %c0_i32_0 : i32, i32
  }
  func.func @transform_3(%arg0: i32) -> (i32, i32) {
    %c0_i32 = arith.constant 0 : i32
    %c0_i32_0 = arith.constant 0 : i32
    %c0_i32_1 = arith.constant 0 : i32
    return %c0_i32, %c0_i32_0 : i32, i32
  }
  func.func @transform_4(%arg0: i32) -> (i32, i32) {
    %c0_i32 = arith.constant 0 : i32
    %c0_i32_0 = arith.constant 0 : i32
    %c0_i32_1 = arith.constant 0 : i32
    return %c0_i32, %c0_i32_0 : i32, i32
  }
  func.func @transform_5(%arg0: i32) -> (i32, i32, i32) {
    %c0_i32 = arith.constant 0 : i32
    %c0_i32_0 = arith.constant 0 : i32
    %c0_i32_1 = arith.constant 0 : i32
    return %arg0, %c0_i32, %c0_i32_0 : i32, i32, i32
  }
}

module attributes {stable_mosaic.version = 11 : i64} {
  func.func @_res_up_kernel(%arg0: i32, %arg1: memref<1x16x144xbf16, #tpu.memory_space<vmem>>, %arg2: memref<16x144xbf16, #tpu.memory_space<vmem>>, %arg3: memref<16x1xf32, #tpu.memory_space<vmem>>, %arg4: memref<16x1xf32, #tpu.memory_space<vmem>>, %arg5: memref<32x144xbf16, #tpu.memory_space<vmem>>, %arg6: memref<32x1xf32, #tpu.memory_space<vmem>>, %arg7: memref<32x1xf32, #tpu.memory_space<vmem>>, %arg8: memref<1x122xf32, #tpu.memory_space<vmem>>, %arg9: memref<1x32x100xbf16, #tpu.memory_space<vmem>>) attributes {dimension_semantics = [#tpu.dimension_semantics<parallel>], iteration_bounds = array<i64: 2>, scalar_prefetch = 0 : i64, scratch_operands = 0 : i64, tpu.core_type = #tpu.core_type<tc>, window_params = [{transform_indices = @transform_0, window_bounds = array<i64: 1, 16, 144>}, {pipeline_mode = #tpu.pipeline_mode<synchronous>, transform_indices = @transform_1, window_bounds = array<i64: 16, 144>}, {pipeline_mode = #tpu.pipeline_mode<synchronous>, transform_indices = @transform_2, window_bounds = array<i64: 16, 1>}, {pipeline_mode = #tpu.pipeline_mode<synchronous>, transform_indices = @transform_3, window_bounds = array<i64: 16, 1>}, {pipeline_mode = #tpu.pipeline_mode<synchronous>, transform_indices = @transform_4, window_bounds = array<i64: 32, 144>}, {pipeline_mode = #tpu.pipeline_mode<synchronous>, transform_indices = @transform_5, window_bounds = array<i64: 32, 1>}, {pipeline_mode = #tpu.pipeline_mode<synchronous>, transform_indices = @transform_6, window_bounds = array<i64: 32, 1>}, {pipeline_mode = #tpu.pipeline_mode<synchronous>, transform_indices = @transform_7, window_bounds = array<i64: 1, 122>}, {transform_indices = @transform_8, window_bounds = array<i64: 1, 32, 100>}]} {
    %c0 = arith.constant 0 : index
    %c0_0 = arith.constant 0 : index
    %c0_1 = arith.constant 0 : index
    %0 = vector.load %arg1[%c0, %c0_0, %c0_1] : memref<1x16x144xbf16, #tpu.memory_space<vmem>>, vector<1x16x144xbf16>
    %1 = vector.shape_cast %0 : vector<1x16x144xbf16> to vector<16x144xbf16>
    %2 = vector.extract_strided_slice %1 {offsets = [0, 0], sizes = [16, 122], strides = [1, 1]} : vector<16x144xbf16> to vector<16x122xbf16>
    %3 = vector.extract_strided_slice %1 {offsets = [0, 1], sizes = [16, 122], strides = [1, 1]} : vector<16x144xbf16> to vector<16x122xbf16>
    %4 = vector.extract_strided_slice %1 {offsets = [0, 2], sizes = [16, 122], strides = [1, 1]} : vector<16x144xbf16> to vector<16x122xbf16>
    %5 = vector.extract_strided_slice %1 {offsets = [0, 10], sizes = [16, 122], strides = [1, 1]} : vector<16x144xbf16> to vector<16x122xbf16>
    %6 = vector.extract_strided_slice %1 {offsets = [0, 11], sizes = [16, 122], strides = [1, 1]} : vector<16x144xbf16> to vector<16x122xbf16>
    %7 = vector.extract_strided_slice %1 {offsets = [0, 12], sizes = [16, 122], strides = [1, 1]} : vector<16x144xbf16> to vector<16x122xbf16>
    %8 = vector.extract_strided_slice %1 {offsets = [0, 20], sizes = [16, 122], strides = [1, 1]} : vector<16x144xbf16> to vector<16x122xbf16>
    %9 = vector.extract_strided_slice %1 {offsets = [0, 21], sizes = [16, 122], strides = [1, 1]} : vector<16x144xbf16> to vector<16x122xbf16>
    %10 = vector.extract_strided_slice %1 {offsets = [0, 22], sizes = [16, 122], strides = [1, 1]} : vector<16x144xbf16> to vector<16x122xbf16>
    %11 = tpu.concatenate %2, %3, %4, %5, %6, %7, %8, %9, %10 in 0 : vector<16x122xbf16>, vector<16x122xbf16>, vector<16x122xbf16>, vector<16x122xbf16>, vector<16x122xbf16>, vector<16x122xbf16>, vector<16x122xbf16>, vector<16x122xbf16>, vector<16x122xbf16> -> vector<144x122xbf16>
    %c0_2 = arith.constant 0 : index
    %c0_3 = arith.constant 0 : index
    %12 = vector.load %arg2[%c0_2, %c0_3] : memref<16x144xbf16, #tpu.memory_space<vmem>>, vector<16x144xbf16>
    %cst = arith.constant dense<0.000000e+00> : vector<16x122xf32>
    %13 = tpu.matmul %12, %11, %cst {dimension_numbers = #tpu.dot_dimension_numbers<[1], [0], [0], [1], [0, 0, 1, 1], [], []>} : vector<16x144xbf16>, vector<144x122xbf16>, vector<16x122xf32> -> vector<16x122xf32>
    %c0_4 = arith.constant 0 : index
    %c0_5 = arith.constant 0 : index
    %14 = vector.load %arg3[%c0_4, %c0_5] : memref<16x1xf32, #tpu.memory_space<vmem>>, vector<16x1xf32>
    %15 = vector.broadcast %14 : vector<16x1xf32> to vector<16x122xf32>
    %16 = arith.mulf %13, %15 : vector<16x122xf32>
    %c0_6 = arith.constant 0 : index
    %c0_7 = arith.constant 0 : index
    %17 = vector.load %arg4[%c0_6, %c0_7] : memref<16x1xf32, #tpu.memory_space<vmem>>, vector<16x1xf32>
    %18 = vector.broadcast %17 : vector<16x1xf32> to vector<16x122xf32>
    %19 = arith.addf %16, %18 : vector<16x122xf32>
    %cst_8 = arith.constant 0.000000e+00 : f32
    %20 = vector.broadcast %cst_8 : f32 to vector<16x122xf32>
    %21 = arith.cmpf ogt, %19, %20 : vector<16x122xf32>
    %cst_9 = arith.constant 0.00999999977 : f32
    %22 = vector.broadcast %cst_9 : f32 to vector<16x122xf32>
    %23 = arith.mulf %22, %19 : vector<16x122xf32>
    %24 = arith.select %21, %19, %23 : vector<16x122xi1>, vector<16x122xf32>
    %c0_10 = arith.constant 0 : index
    %c0_11 = arith.constant 0 : index
    %25 = vector.load %arg8[%c0_10, %c0_11] : memref<1x122xf32, #tpu.memory_space<vmem>>, vector<1x122xf32>
    %26 = vector.broadcast %25 : vector<1x122xf32> to vector<16x122xf32>
    %27 = arith.mulf %24, %26 : vector<16x122xf32>
    %28 = arith.extf %6 : vector<16x122xbf16> to vector<16x122xf32>
    %29 = arith.addf %27, %28 : vector<16x122xf32>
    %30 = arith.truncf %29 : vector<16x122xf32> to vector<16x122xbf16>
    %31 = vector.extract_strided_slice %30 {offsets = [0, 0], sizes = [16, 100], strides = [1, 1]} : vector<16x122xbf16> to vector<16x100xbf16>
    %32 = vector.extract_strided_slice %30 {offsets = [0, 1], sizes = [16, 100], strides = [1, 1]} : vector<16x122xbf16> to vector<16x100xbf16>
    %33 = vector.extract_strided_slice %30 {offsets = [0, 2], sizes = [16, 100], strides = [1, 1]} : vector<16x122xbf16> to vector<16x100xbf16>
    %34 = vector.extract_strided_slice %30 {offsets = [0, 10], sizes = [16, 100], strides = [1, 1]} : vector<16x122xbf16> to vector<16x100xbf16>
    %35 = vector.extract_strided_slice %30 {offsets = [0, 11], sizes = [16, 100], strides = [1, 1]} : vector<16x122xbf16> to vector<16x100xbf16>
    %36 = vector.extract_strided_slice %30 {offsets = [0, 12], sizes = [16, 100], strides = [1, 1]} : vector<16x122xbf16> to vector<16x100xbf16>
    %37 = vector.extract_strided_slice %30 {offsets = [0, 20], sizes = [16, 100], strides = [1, 1]} : vector<16x122xbf16> to vector<16x100xbf16>
    %38 = vector.extract_strided_slice %30 {offsets = [0, 21], sizes = [16, 100], strides = [1, 1]} : vector<16x122xbf16> to vector<16x100xbf16>
    %39 = vector.extract_strided_slice %30 {offsets = [0, 22], sizes = [16, 100], strides = [1, 1]} : vector<16x122xbf16> to vector<16x100xbf16>
    %40 = tpu.concatenate %31, %32, %33, %34, %35, %36, %37, %38, %39 in 0 : vector<16x100xbf16>, vector<16x100xbf16>, vector<16x100xbf16>, vector<16x100xbf16>, vector<16x100xbf16>, vector<16x100xbf16>, vector<16x100xbf16>, vector<16x100xbf16>, vector<16x100xbf16> -> vector<144x100xbf16>
    %c0_12 = arith.constant 0 : index
    %c0_13 = arith.constant 0 : index
    %41 = vector.load %arg5[%c0_12, %c0_13] : memref<32x144xbf16, #tpu.memory_space<vmem>>, vector<32x144xbf16>
    %cst_14 = arith.constant dense<0.000000e+00> : vector<32x100xf32>
    %42 = tpu.matmul %41, %40, %cst_14 {dimension_numbers = #tpu.dot_dimension_numbers<[1], [0], [0], [1], [0, 0, 1, 1], [], []>} : vector<32x144xbf16>, vector<144x100xbf16>, vector<32x100xf32> -> vector<32x100xf32>
    %c0_15 = arith.constant 0 : index
    %c0_16 = arith.constant 0 : index
    %43 = vector.load %arg6[%c0_15, %c0_16] : memref<32x1xf32, #tpu.memory_space<vmem>>, vector<32x1xf32>
    %44 = vector.broadcast %43 : vector<32x1xf32> to vector<32x100xf32>
    %45 = arith.mulf %42, %44 : vector<32x100xf32>
    %c0_17 = arith.constant 0 : index
    %c0_18 = arith.constant 0 : index
    %46 = vector.load %arg7[%c0_17, %c0_18] : memref<32x1xf32, #tpu.memory_space<vmem>>, vector<32x1xf32>
    %47 = vector.broadcast %46 : vector<32x1xf32> to vector<32x100xf32>
    %48 = arith.addf %45, %47 : vector<32x100xf32>
    %cst_19 = arith.constant 0.000000e+00 : f32
    %49 = vector.broadcast %cst_19 : f32 to vector<32x100xf32>
    %50 = arith.cmpf ogt, %48, %49 : vector<32x100xf32>
    %cst_20 = arith.constant 0.00999999977 : f32
    %51 = vector.broadcast %cst_20 : f32 to vector<32x100xf32>
    %52 = arith.mulf %51, %48 : vector<32x100xf32>
    %53 = arith.select %50, %48, %52 : vector<32x100xi1>, vector<32x100xf32>
    %54 = arith.truncf %53 : vector<32x100xf32> to vector<32x100xbf16>
    %c0_21 = arith.constant 0 : index
    %c0_22 = arith.constant 0 : index
    %c0_23 = arith.constant 0 : index
    %55 = vector.load %arg9[%c0_21, %c0_22, %c0_23] : memref<1x32x100xbf16, #tpu.memory_space<vmem>>, vector<1x32x100xbf16>
    %56 = vector.shape_cast %55 : vector<1x32x100xbf16> to vector<32x100xbf16>
    %57 = vector.shape_cast %54 : vector<32x100xbf16> to vector<1x32x100xbf16>
    tpu.vector_store %arg9[%c0_21, %c0_22, %c0_23], %57 {strides = array<i32>} : memref<1x32x100xbf16, #tpu.memory_space<vmem>>, vector<1x32x100xbf16>,
    return
  }
  func.func @transform_0(%arg0: i32) -> (i32, i32, i32) {
    %c0_i32 = arith.constant 0 : i32
    %c0_i32_0 = arith.constant 0 : i32
    %c0_i32_1 = arith.constant 0 : i32
    return %arg0, %c0_i32, %c0_i32_0 : i32, i32, i32
  }
  func.func @transform_1(%arg0: i32) -> (i32, i32) {
    %c0_i32 = arith.constant 0 : i32
    %c0_i32_0 = arith.constant 0 : i32
    %c0_i32_1 = arith.constant 0 : i32
    return %c0_i32, %c0_i32_0 : i32, i32
  }
  func.func @transform_2(%arg0: i32) -> (i32, i32) {
    %c0_i32 = arith.constant 0 : i32
    %c0_i32_0 = arith.constant 0 : i32
    %c0_i32_1 = arith.constant 0 : i32
    return %c0_i32, %c0_i32_0 : i32, i32
  }
  func.func @transform_3(%arg0: i32) -> (i32, i32) {
    %c0_i32 = arith.constant 0 : i32
    %c0_i32_0 = arith.constant 0 : i32
    %c0_i32_1 = arith.constant 0 : i32
    return %c0_i32, %c0_i32_0 : i32, i32
  }
  func.func @transform_4(%arg0: i32) -> (i32, i32) {
    %c0_i32 = arith.constant 0 : i32
    %c0_i32_0 = arith.constant 0 : i32
    %c0_i32_1 = arith.constant 0 : i32
    return %c0_i32, %c0_i32_0 : i32, i32
  }
  func.func @transform_5(%arg0: i32) -> (i32, i32) {
    %c0_i32 = arith.constant 0 : i32
    %c0_i32_0 = arith.constant 0 : i32
    %c0_i32_1 = arith.constant 0 : i32
    return %c0_i32, %c0_i32_0 : i32, i32
  }
  func.func @transform_6(%arg0: i32) -> (i32, i32) {
    %c0_i32 = arith.constant 0 : i32
    %c0_i32_0 = arith.constant 0 : i32
    %c0_i32_1 = arith.constant 0 : i32
    return %c0_i32, %c0_i32_0 : i32, i32
  }
  func.func @transform_7(%arg0: i32) -> (i32, i32) {
    %c0_i32 = arith.constant 0 : i32
    %c0_i32_0 = arith.constant 0 : i32
    %c0_i32_1 = arith.constant 0 : i32
    return %c0_i32, %c0_i32_0 : i32, i32
  }
  func.func @transform_8(%arg0: i32) -> (i32, i32, i32) {
    %c0_i32 = arith.constant 0 : i32
    %c0_i32_0 = arith.constant 0 : i32
    %c0_i32_1 = arith.constant 0 : i32
    return %arg0, %c0_i32, %c0_i32_0 : i32, i32, i32
  }
}

module attributes {stable_mosaic.version = 11 : i64} {
  func.func @_res_up_kernel(%arg0: i32, %arg1: memref<1x8x400xbf16, #tpu.memory_space<vmem>>, %arg2: memref<8x72xbf16, #tpu.memory_space<vmem>>, %arg3: memref<8x1xf32, #tpu.memory_space<vmem>>, %arg4: memref<8x1xf32, #tpu.memory_space<vmem>>, %arg5: memref<16x72xbf16, #tpu.memory_space<vmem>>, %arg6: memref<16x1xf32, #tpu.memory_space<vmem>>, %arg7: memref<16x1xf32, #tpu.memory_space<vmem>>, %arg8: memref<1x362xf32, #tpu.memory_space<vmem>>, %arg9: memref<1x16x324xbf16, #tpu.memory_space<vmem>>) attributes {dimension_semantics = [#tpu.dimension_semantics<parallel>], iteration_bounds = array<i64: 2>, scalar_prefetch = 0 : i64, scratch_operands = 0 : i64, tpu.core_type = #tpu.core_type<tc>, window_params = [{transform_indices = @transform_0, window_bounds = array<i64: 1, 8, 400>}, {pipeline_mode = #tpu.pipeline_mode<synchronous>, transform_indices = @transform_1, window_bounds = array<i64: 8, 72>}, {pipeline_mode = #tpu.pipeline_mode<synchronous>, transform_indices = @transform_2, window_bounds = array<i64: 8, 1>}, {pipeline_mode = #tpu.pipeline_mode<synchronous>, transform_indices = @transform_3, window_bounds = array<i64: 8, 1>}, {pipeline_mode = #tpu.pipeline_mode<synchronous>, transform_indices = @transform_4, window_bounds = array<i64: 16, 72>}, {pipeline_mode = #tpu.pipeline_mode<synchronous>, transform_indices = @transform_5, window_bounds = array<i64: 16, 1>}, {pipeline_mode = #tpu.pipeline_mode<synchronous>, transform_indices = @transform_6, window_bounds = array<i64: 16, 1>}, {pipeline_mode = #tpu.pipeline_mode<synchronous>, transform_indices = @transform_7, window_bounds = array<i64: 1, 362>}, {transform_indices = @transform_8, window_bounds = array<i64: 1, 16, 324>}]} {
    %c0 = arith.constant 0 : index
    %c0_0 = arith.constant 0 : index
    %c0_1 = arith.constant 0 : index
    %0 = vector.load %arg1[%c0, %c0_0, %c0_1] : memref<1x8x400xbf16, #tpu.memory_space<vmem>>, vector<1x8x400xbf16>
    %1 = vector.shape_cast %0 : vector<1x8x400xbf16> to vector<8x400xbf16>
    %2 = vector.extract_strided_slice %1 {offsets = [0, 0], sizes = [8, 362], strides = [1, 1]} : vector<8x400xbf16> to vector<8x362xbf16>
    %3 = vector.extract_strided_slice %1 {offsets = [0, 1], sizes = [8, 362], strides = [1, 1]} : vector<8x400xbf16> to vector<8x362xbf16>
    %4 = vector.extract_strided_slice %1 {offsets = [0, 2], sizes = [8, 362], strides = [1, 1]} : vector<8x400xbf16> to vector<8x362xbf16>
    %5 = vector.extract_strided_slice %1 {offsets = [0, 18], sizes = [8, 362], strides = [1, 1]} : vector<8x400xbf16> to vector<8x362xbf16>
    %6 = vector.extract_strided_slice %1 {offsets = [0, 19], sizes = [8, 362], strides = [1, 1]} : vector<8x400xbf16> to vector<8x362xbf16>
    %7 = vector.extract_strided_slice %1 {offsets = [0, 20], sizes = [8, 362], strides = [1, 1]} : vector<8x400xbf16> to vector<8x362xbf16>
    %8 = vector.extract_strided_slice %1 {offsets = [0, 36], sizes = [8, 362], strides = [1, 1]} : vector<8x400xbf16> to vector<8x362xbf16>
    %9 = vector.extract_strided_slice %1 {offsets = [0, 37], sizes = [8, 362], strides = [1, 1]} : vector<8x400xbf16> to vector<8x362xbf16>
    %10 = vector.extract_strided_slice %1 {offsets = [0, 38], sizes = [8, 362], strides = [1, 1]} : vector<8x400xbf16> to vector<8x362xbf16>
    %11 = tpu.concatenate %2, %3, %4, %5, %6, %7, %8, %9, %10 in 0 : vector<8x362xbf16>, vector<8x362xbf16>, vector<8x362xbf16>, vector<8x362xbf16>, vector<8x362xbf16>, vector<8x362xbf16>, vector<8x362xbf16>, vector<8x362xbf16>, vector<8x362xbf16> -> vector<72x362xbf16>
    %c0_2 = arith.constant 0 : index
    %c0_3 = arith.constant 0 : index
    %12 = vector.load %arg2[%c0_2, %c0_3] : memref<8x72xbf16, #tpu.memory_space<vmem>>, vector<8x72xbf16>
    %cst = arith.constant dense<0.000000e+00> : vector<8x362xf32>
    %13 = tpu.matmul %12, %11, %cst {dimension_numbers = #tpu.dot_dimension_numbers<[1], [0], [0], [1], [0, 0, 1, 1], [], []>} : vector<8x72xbf16>, vector<72x362xbf16>, vector<8x362xf32> -> vector<8x362xf32>
    %c0_4 = arith.constant 0 : index
    %c0_5 = arith.constant 0 : index
    %14 = vector.load %arg3[%c0_4, %c0_5] : memref<8x1xf32, #tpu.memory_space<vmem>>, vector<8x1xf32>
    %15 = vector.broadcast %14 : vector<8x1xf32> to vector<8x362xf32>
    %16 = arith.mulf %13, %15 : vector<8x362xf32>
    %c0_6 = arith.constant 0 : index
    %c0_7 = arith.constant 0 : index
    %17 = vector.load %arg4[%c0_6, %c0_7] : memref<8x1xf32, #tpu.memory_space<vmem>>, vector<8x1xf32>
    %18 = vector.broadcast %17 : vector<8x1xf32> to vector<8x362xf32>
    %19 = arith.addf %16, %18 : vector<8x362xf32>
    %cst_8 = arith.constant 0.000000e+00 : f32
    %20 = vector.broadcast %cst_8 : f32 to vector<8x362xf32>
    %21 = arith.cmpf ogt, %19, %20 : vector<8x362xf32>
    %cst_9 = arith.constant 0.00999999977 : f32
    %22 = vector.broadcast %cst_9 : f32 to vector<8x362xf32>
    %23 = arith.mulf %22, %19 : vector<8x362xf32>
    %24 = arith.select %21, %19, %23 : vector<8x362xi1>, vector<8x362xf32>
    %c0_10 = arith.constant 0 : index
    %c0_11 = arith.constant 0 : index
    %25 = vector.load %arg8[%c0_10, %c0_11] : memref<1x362xf32, #tpu.memory_space<vmem>>, vector<1x362xf32>
    %26 = vector.broadcast %25 : vector<1x362xf32> to vector<8x362xf32>
    %27 = arith.mulf %24, %26 : vector<8x362xf32>
    %28 = arith.extf %6 : vector<8x362xbf16> to vector<8x362xf32>
    %29 = arith.addf %27, %28 : vector<8x362xf32>
    %30 = arith.truncf %29 : vector<8x362xf32> to vector<8x362xbf16>
    %31 = vector.extract_strided_slice %30 {offsets = [0, 0], sizes = [8, 324], strides = [1, 1]} : vector<8x362xbf16> to vector<8x324xbf16>
    %32 = vector.extract_strided_slice %30 {offsets = [0, 1], sizes = [8, 324], strides = [1, 1]} : vector<8x362xbf16> to vector<8x324xbf16>
    %33 = vector.extract_strided_slice %30 {offsets = [0, 2], sizes = [8, 324], strides = [1, 1]} : vector<8x362xbf16> to vector<8x324xbf16>
    %34 = vector.extract_strided_slice %30 {offsets = [0, 18], sizes = [8, 324], strides = [1, 1]} : vector<8x362xbf16> to vector<8x324xbf16>
    %35 = vector.extract_strided_slice %30 {offsets = [0, 19], sizes = [8, 324], strides = [1, 1]} : vector<8x362xbf16> to vector<8x324xbf16>
    %36 = vector.extract_strided_slice %30 {offsets = [0, 20], sizes = [8, 324], strides = [1, 1]} : vector<8x362xbf16> to vector<8x324xbf16>
    %37 = vector.extract_strided_slice %30 {offsets = [0, 36], sizes = [8, 324], strides = [1, 1]} : vector<8x362xbf16> to vector<8x324xbf16>
    %38 = vector.extract_strided_slice %30 {offsets = [0, 37], sizes = [8, 324], strides = [1, 1]} : vector<8x362xbf16> to vector<8x324xbf16>
    %39 = vector.extract_strided_slice %30 {offsets = [0, 38], sizes = [8, 324], strides = [1, 1]} : vector<8x362xbf16> to vector<8x324xbf16>
    %40 = tpu.concatenate %31, %32, %33, %34, %35, %36, %37, %38, %39 in 0 : vector<8x324xbf16>, vector<8x324xbf16>, vector<8x324xbf16>, vector<8x324xbf16>, vector<8x324xbf16>, vector<8x324xbf16>, vector<8x324xbf16>, vector<8x324xbf16>, vector<8x324xbf16> -> vector<72x324xbf16>
    %c0_12 = arith.constant 0 : index
    %c0_13 = arith.constant 0 : index
    %41 = vector.load %arg5[%c0_12, %c0_13] : memref<16x72xbf16, #tpu.memory_space<vmem>>, vector<16x72xbf16>
    %cst_14 = arith.constant dense<0.000000e+00> : vector<16x324xf32>
    %42 = tpu.matmul %41, %40, %cst_14 {dimension_numbers = #tpu.dot_dimension_numbers<[1], [0], [0], [1], [0, 0, 1, 1], [], []>} : vector<16x72xbf16>, vector<72x324xbf16>, vector<16x324xf32> -> vector<16x324xf32>
    %c0_15 = arith.constant 0 : index
    %c0_16 = arith.constant 0 : index
    %43 = vector.load %arg6[%c0_15, %c0_16] : memref<16x1xf32, #tpu.memory_space<vmem>>, vector<16x1xf32>
    %44 = vector.broadcast %43 : vector<16x1xf32> to vector<16x324xf32>
    %45 = arith.mulf %42, %44 : vector<16x324xf32>
    %c0_17 = arith.constant 0 : index
    %c0_18 = arith.constant 0 : index
    %46 = vector.load %arg7[%c0_17, %c0_18] : memref<16x1xf32, #tpu.memory_space<vmem>>, vector<16x1xf32>
    %47 = vector.broadcast %46 : vector<16x1xf32> to vector<16x324xf32>
    %48 = arith.addf %45, %47 : vector<16x324xf32>
    %cst_19 = arith.constant 0.000000e+00 : f32
    %49 = vector.broadcast %cst_19 : f32 to vector<16x324xf32>
    %50 = arith.cmpf ogt, %48, %49 : vector<16x324xf32>
    %cst_20 = arith.constant 0.00999999977 : f32
    %51 = vector.broadcast %cst_20 : f32 to vector<16x324xf32>
    %52 = arith.mulf %51, %48 : vector<16x324xf32>
    %53 = arith.select %50, %48, %52 : vector<16x324xi1>, vector<16x324xf32>
    %54 = arith.truncf %53 : vector<16x324xf32> to vector<16x324xbf16>
    %c0_21 = arith.constant 0 : index
    %c0_22 = arith.constant 0 : index
    %c0_23 = arith.constant 0 : index
    %55 = vector.load %arg9[%c0_21, %c0_22, %c0_23] : memref<1x16x324xbf16, #tpu.memory_space<vmem>>, vector<1x16x324xbf16>
    %56 = vector.shape_cast %55 : vector<1x16x324xbf16> to vector<16x324xbf16>
    %57 = vector.shape_cast %54 : vector<16x324xbf16> to vector<1x16x324xbf16>
    tpu.vector_store %arg9[%c0_21, %c0_22, %c0_23], %57 {strides = array<i32>} : memref<1x16x324xbf16, #tpu.memory_space<vmem>>, vector<1x16x324xbf16>,
    return
  }
  func.func @transform_0(%arg0: i32) -> (i32, i32, i32) {
    %c0_i32 = arith.constant 0 : i32
    %c0_i32_0 = arith.constant 0 : i32
    %c0_i32_1 = arith.constant 0 : i32
    return %arg0, %c0_i32, %c0_i32_0 : i32, i32, i32
  }
  func.func @transform_1(%arg0: i32) -> (i32, i32) {
    %c0_i32 = arith.constant 0 : i32
    %c0_i32_0 = arith.constant 0 : i32
    %c0_i32_1 = arith.constant 0 : i32
    return %c0_i32, %c0_i32_0 : i32, i32
  }
  func.func @transform_2(%arg0: i32) -> (i32, i32) {
    %c0_i32 = arith.constant 0 : i32
    %c0_i32_0 = arith.constant 0 : i32
    %c0_i32_1 = arith.constant 0 : i32
    return %c0_i32, %c0_i32_0 : i32, i32
  }
  func.func @transform_3(%arg0: i32) -> (i32, i32) {
    %c0_i32 = arith.constant 0 : i32
    %c0_i32_0 = arith.constant 0 : i32
    %c0_i32_1 = arith.constant 0 : i32
    return %c0_i32, %c0_i32_0 : i32, i32
  }
  func.func @transform_4(%arg0: i32) -> (i32, i32) {
    %c0_i32 = arith.constant 0 : i32
    %c0_i32_0 = arith.constant 0 : i32
    %c0_i32_1 = arith.constant 0 : i32
    return %c0_i32, %c0_i32_0 : i32, i32
  }
  func.func @transform_5(%arg0: i32) -> (i32, i32) {
    %c0_i32 = arith.constant 0 : i32
    %c0_i32_0 = arith.constant 0 : i32
    %c0_i32_1 = arith.constant 0 : i32
    return %c0_i32, %c0_i32_0 : i32, i32
  }
  func.func @transform_6(%arg0: i32) -> (i32, i32) {
    %c0_i32 = arith.constant 0 : i32
    %c0_i32_0 = arith.constant 0 : i32
    %c0_i32_1 = arith.constant 0 : i32
    return %c0_i32, %c0_i32_0 : i32, i32
  }
  func.func @transform_7(%arg0: i32) -> (i32, i32) {
    %c0_i32 = arith.constant 0 : i32
    %c0_i32_0 = arith.constant 0 : i32
    %c0_i32_1 = arith.constant 0 : i32
    return %c0_i32, %c0_i32_0 : i32, i32
  }
  func.func @transform_8(%arg0: i32) -> (i32, i32, i32) {
    %c0_i32 = arith.constant 0 : i32
    %c0_i32_0 = arith.constant 0 : i32
    %c0_i32_1 = arith.constant 0 : i32
    return %arg0, %c0_i32, %c0_i32_0 : i32, i32, i32
  }
}

</mosaic_0001>

<bundles_post_ra>
// kernel: cnn_decoder_forward.3
= control target key start
LH: loop header
LB: loop body
LE: loop exit
PB: predicated region body
PF: predicated region fallthrough
CT: control target
= control target key end

     0   :  { %s547_s18 = smov 0   ;;  %s589_s0 = inlined_call_operand.vmem [shape: bf16[2,4,122], index: 0, kind: input, shape index: {}]   ;;  %s590_s1 = inlined_call_operand.vmem [shape: bf16[16,36], index: 1, kind: input, shape index: {}]   ;;  %s591_s2 = inlined_call_operand.vmem [shape: f32[16,1], index: 2, kind: input, shape index: {}]   ;;  %s592_s3 = inlined_call_operand.vmem [shape: f32[16,1], index: 3, kind: input, shape index: {}]   ;;  %s593_s4 = inlined_call_operand.vmem [shape: f32[1,100], index: 4, kind: input, shape index: {}]   ;;  %s594_s5 = inlined_call_operand.vmem [shape: bf16[2,16,100], index: 5, kind: output, shape index: {}]  }
   0x1 LB: > { %s441_s19 = sadd.s32 4294967295, %s503_s18   ;;  %p445_p0 = scmp.ge.s32.totalorder %s503_s18, 1  ;;  %s503_s18 = sphi %s547_s18, %s15_s18  }
   0x2   : > { %p186_p1 = scmp.lt.s32.totalorder %s503_s18, 3 }
   0x4   : > { %p187_p2 = pnand %p445_p0, %p186_p1 }
   0x5   : > { %p213_p3 = scmp.lt.s32.totalorder (!%p187_p2), %s441_s19, 1  ;;  %s507_s24 = smov (!%p187_p2), 106  }
   0x6   : > { %190 = sbr.rel (%p187_p2) target bundleno = 361 (0x169), region = 40  ;;  %s508_s25 = smov (!%p187_p2), 116  }
   0x7   : > { %s510_s26 = smov (!%p187_p2), 117   ;;  %s511_s27 = smov (!%p187_p2), 108  }
   0x8   : > { %s513_s28 = smov (!%p187_p2), 107   ;;  %s514_s29 = smov (!%p187_p2), 127  }
   0x9   : > { %s515_s30 = smov (!%p187_p2), 126   ;;  %s516_s8 = smov (!%p187_p2), 118  }
   0xb   : > { %v229_v0 = vlaneseq  ;;  %v505_v1 = vmov 1983009808   ;;  %v506_v3 = vmov 0.0   ;;  %s596_s19 = smov (!%p213_p3, %s441_s19), 1  ;;  %vm509_vm0 = vmmov 0   ;;  %v332_v14 = vld [vmem:[%s591_s2] sm:$0xff] }
   0xc   : > { %v227_v2 = vunpack.c.l.s4 %v505_v1  ;;  %463 = vmatprep.subr.bf16.mxu0 %v506_v3  ;;  %s446_s20 = sshll.u32 %s596_s19, 1  ;;  %469 = vmatprep.mubr.msk.bf16.mxu0 %vm509_vm0, %v506_v3  ;;  %v512_v13 = vmov 0   ;;  %v333_v15 = vld [vmem:[%s591_s2 + $0x8] sm:$0xff]  ;;  %v346_v17 = vld [vmem:[%s592_s3] sm:$0xff]  ;;  %vm258_vm1 = vcmask 1041408   ;;  %vm262_vm2 = vcmask 1043456  }
   0xd   : > { %v230_v4 = vshrl.u32 %v229_v0, 7  ;;  %s216_s23 = scalar_lea.vmem %s589_s0, %s446_s20  ;;  %493 = vset.pattern.permute.xlu0 %v512_v13  ;;  %494 = vset.pattern.permute.xlu1 %v512_v13  ;;  %v347_v16 = vld [vmem:[%s592_s3 + $0x8] sm:$0xff]  ;;  %vm265_vm3 = vcmask 1045504   ;;  %v496_v33 = vld [vmem:[%s590_s1] sm:$0xff]   ;;  %vm284_vm4 = vcmask 293888   ;;  %s456_s21 = sshll.u32 %s596_s19, 3 }
   0xe   : > { %v228_v5 = vunpack.c.0.s8 %v227_v2  ;;  %v223_v7 = vld [vmem:[%s216_s23] sm:$0x3]  ;;  %vm383_vm6 = vcmask 814080  }
   0xf   : > { %v225_v9 = vcombine.low %v223_v7, %v223_v7  ;;  %v451_v42 = vld [vmem:[%s593_s4] ss:$0 sm:$0xff] }
  0x10   : > { %v231_v6 = vsub.s32 %v228_v5, %v230_v4 }
  0x12   : > { %v239_v8 = vrot.slane %v223_v7, %v231_v6  ;;  %v232_v10 = vrot.slane %v225_v9, %v231_v6 }
  0x14   : > { %256 = vrot.lane.b32.xlu0 %v239_v8, %s507_s24  ;;  %250 = vrot.lane.b32.xlu1 %v232_v10, %s508_s25  ;;  %v242_v11 = vcombine.low %v239_v8, %v239_v8  ;;  %v245_v12 = vcombine.low %v232_v10, %v232_v10  ;;  %s221_s24 = scalar_lea.vmem %s594_s5, %s456_s21 }
  0x18   : > { %248 = vrot.lane.b32.xlu0 %v239_v8, %s510_s26  ;;  %252 = vrot.lane.b32.xlu1 %v242_v11, %s511_s27 }
  0x1c   : > { %254 = vrot.lane.b32.xlu0 %v245_v12, %s513_s28  ;;  %240 = vrot.lane.b32.xlu1 %v232_v10, %s514_s29 }
  0x20   : > { %243 = vrot.lane.b32.xlu0 %v242_v11, %s515_s30  ;;  %246 = vrot.lane.b32.xlu1 %v245_v12, %s516_s8 }
  0x24   : > { %336 = vperm.xlu0 %493, %v332_v14   ;;  %341 = vperm.xlu1 %494, %v333_v15  }
  0x28   : > { %355 = vperm.xlu0 %493, %v347_v16   ;;  %350 = vperm.xlu1 %494, %v346_v17  }
  0x86   : > { %v257_v18 = vpop.permute.xlu0 %256  ;;  %v251_v20 = vpop.permute.xlu1 %250 }
  0x87   : > { %v289_v19 = vsel %vm258_vm1, %v257_v18, 0 }
  0x88   : > { %464 = vmatpush3.bf16.msra.mxu0 %v289_v19 }
  0x89   : > { %465 = vmatprep.subr.bf16.mxu0 %v506_v3 }
  0x8a   : > { %v249_v21 = vpop.permute.xlu0 %248  ;;  %v253_v23 = vpop.permute.xlu1 %252 }
  0x8b   : > { %v271_v22 = vsel %vm258_vm1, %v249_v21, %v251_v20 }
  0x8c   : > { %v273_v24 = vsel %vm262_vm2, %v271_v22, %v253_v23 }
  0x8e   : > { %v255_v25 = vpop.permute.xlu0 %254  ;;  %v241_v27 = vpop.permute.xlu1 %240 }
  0x8f   : > { %v275_v26 = vsel %vm265_vm3, %v273_v24, %v255_v25  ;;  %v261_v28 = vsel %vm258_vm1, %v223_v7, %v241_v27 }
  0x90   : > { %466 = vmatpush3.bf16.msra.mxu0 %v275_v26 }
  0x91   : > { %467 = vmatprep.subr.bf16.mxu0 %v506_v3 }
  0x92   : > { %v244_v29 = vpop.permute.xlu0 %243  ;;  %v247_v31 = vpop.permute.xlu1 %246 }
  0x93   : > { %v264_v30 = vsel %vm262_vm2, %v261_v28, %v244_v29 }
  0x94   : > { %v267_v32 = vsel %vm265_vm3, %v264_v30, %v247_v31 }
  0x95   : > { %468 = vmatpush3.bf16.msra.mxu0 %v267_v32 }
  0x98   : > { %470 = vmatmul.mubr.msk.bf16.vlgmr.msra.gmra.mxu0 %vm284_vm4, %v496_v33 }
  0x9f   : > { %v342_v34 = vpop.permute.xlu1 %341  ;;  %v337_v35 = vpop.permute.xlu0 %336 }
  0xa3   : > { %v351_v37 = vpop.permute.xlu1 %350  ;;  %v356_v45 = vpop.permute.xlu0 %355 }
 0x158   : > { %v325_v36 = vpop.f32.mrf.mxu0 }
 0x159   : > { %v344_v38 = vmul.f32 %v337_v35, %v325_v36 }
 0x15a   : > { %v471_v39 = vpop.f32.mrf.mxu0 }
 0x15b   : > { %v358_v40 = vadd.f32 %v351_v37, %v344_v38 }
 0x15c   : > { %v328_v41 = vpop.f32.mrf.mxu0 }
 0x15d   : > { %vm360_vm5 = vcmp.gt.f32.partialorder %v358_v40, 0.0  ;;  %v362_v43 = vmul.f32 0.01, %v358_v40  ;;  %v345_v44 = vmul.f32 %v342_v34, %v328_v41 }
 0x15e   : > { %v472_v46 = vpop.f32.mrf.mxu0 }
 0x15f   : > { %v364_v47 = vsel %vm360_vm5, %v358_v40, %v362_v43  ;;  %v359_v48 = vadd.f32 %v356_v45, %v345_v44 }
 0x160   : > { %v373_v49 = vmul.f32 %v451_v42, %v364_v47 }
 0x161   : > { %vm361_vm7 = vcmp.gt.f32.partialorder %v359_v48, 0.0  ;;  %v363_v50 = vmul.f32 0.01, %v359_v48 }
 0x162   : > { %v457_v51 = vpack.c.bf16 %v373_v49, %v373_v49 }
 0x163   : > { %v365_v52 = vsel %vm361_vm7, %v359_v48, %v363_v50 }
 0x164   : > { %384 = vst.msk [vmem:[%s221_s24] sm:$0xf] %vm383_vm6, %v457_v51  ;;  %v374_v53 = vmul.f32 %v451_v42, %v365_v52 }
 0x166   : > { %v458_v54 = vpack.c.bf16 %v374_v53, %v374_v53 }
 0x168   : > { %385 = vst.msk [vmem:[%s221_s24 + $0x4] sm:$0xf] %vm383_vm6, %v458_v54 }
 0x169 PF: > { %s15_s18 = sadd.s32 1, %s503_s18  }
 0x16a   : > { %p12_p4 = scmp.ge.s32.totalorder %s15_s18, 4  }
 0x16c   :  { %14 = sbr.rel (!%p12_p4) target bundleno = 1 (0x1), region = 70 }

// kernel: cnn_decoder_forward.4
= control target key start
LH: loop header
LB: loop body
LE: loop exit
PB: predicated region body
PF: predicated region fallthrough
CT: control target
= control target key end

     0   :  { %s870_s27 = smov 0   ;;  %s1016_s0 = inlined_call_operand.vmem [shape: bf16[2,16,144], index: 0, kind: input, shape index: {}]   ;;  %s1017_s1 = inlined_call_operand.vmem [shape: bf16[16,144], index: 1, kind: input, shape index: {}]   ;;  %s1018_s2 = inlined_call_operand.vmem [shape: f32[16,1], index: 2, kind: input, shape index: {}]   ;;  %s1019_s3 = inlined_call_operand.vmem [shape: f32[16,1], index: 3, kind: input, shape index: {}]   ;;  %s1020_s4 = inlined_call_operand.vmem [shape: bf16[32,144], index: 4, kind: input, shape index: {}]   ;;  %s1021_s5 = inlined_call_operand.vmem [shape: f32[32,1], index: 5, kind: input, shape index: {}]   ;;  %s1022_s6 = inlined_call_operand.vmem [shape: f32[32,1], index: 6, kind: input, shape index: {}]   ;;  %s1023_s7 = inlined_call_operand.vmem [shape: f32[1,122], index: 7, kind: input, shape index: {}]   ;;  %s1024_s8 = inlined_call_operand.vmem [shape: bf16[2,32,100], index: 8, kind: output, shape index: {}]  }
   0x1 LB: > { %s735_s28 = sadd.s32 4294967295, %s814_s27   ;;  %p739_p0 = scmp.ge.s32.totalorder %s814_s27, 1  ;;  %s814_s27 = sphi %s870_s27, %s18_s27  }
   0x2   : > { %p262_p1 = scmp.lt.s32.totalorder %s814_s27, 3 }
   0x4   : > { %p263_p2 = pnand %p739_p0, %p262_p1 }
   0x5   : > { %p296_p3 = scmp.lt.s32.totalorder (!%p263_p2), %s735_s28, 1  ;;  %s817_s11 = smov (!%p263_p2), 108  }
   0x6   : > { %266 = sbr.rel (%p263_p2) target bundleno = 747 (0x2eb), region = 52  ;;  %s818_s12 = smov (!%p263_p2), 107  }
   0x7   : > { %s819_s13 = smov (!%p263_p2), 116   ;;  %s820_s14 = smov (!%p263_p2), 117  }
   0x8   : > { %s821_s15 = smov (!%p263_p2), 118   ;;  %s822_s16 = smov (!%p263_p2), 126  }
   0x9   : > { %s823_s17 = smov (!%p263_p2), 127   ;;  %s824_s18 = smov (!%p263_p2), 106  }
   0xb   : > { %v816_v0 = vmov 0   ;;  %s1026_s28 = smov (!%p296_p3, %s735_s28), 1  ;;  %v801_v5 = vld [vmem:[%s1017_s1 + $0x4] ss:$8 sps:$4 sm:$0xff]   ;;  %vm377_vm0 = vcmask 130048   ;;  %vm356_vm1 = vcmask 875520  }
   0xc   : > { %381 = vmatprep.subr.bf16.mxu0 %v816_v0  ;;  %786 = vset.pattern.permute.xlu1 %v816_v0  ;;  %s762_s29 = sshll.u32 %s1026_s28, 4  ;;  %v423_v6 = vld [vmem:[%s1018_s2 + $0x8] sm:$0xff]  ;;  %v422_v7 = vld [vmem:[%s1018_s2] sm:$0xff]  ;;  %vm349_vm2 = vcmask 883712   ;;  %vm342_vm3 = vcmask 949248   ;;  %vm335_vm4 = vcmask 957440  }
   0xd   : > { %785 = vset.pattern.permute.xlu0 %v816_v0  ;;  %542 = vmatprep.subr.bf16.mxu1 %v816_v0  ;;  %s300_s10 = scalar_lea.vmem %s1016_s0, %s762_s29  ;;  %v436_v12 = vld [vmem:[%s1019_s3] sm:$0xff]  ;;  %v437_v13 = vld [vmem:[%s1019_s3 + $0x8] sm:$0xff]  ;;  %vm328_vm5 = vcmask 965632   ;;  %vm363_vm6 = vcmask 867328   ;;  %vm675_vm10 = vcmask 814080  }
   0xe   : > { %v307_v1 = vld [vmem:[%s300_s10] sm:$0xff]  ;;  %v308_v2 = vld [vmem:[%s300_s10 + $0x8] sm:$0xff]  ;;  %748 = vmatprep.mubr.msk.bf16.mxu0 %vm377_vm0, %v801_v5 }
   0xf   : > { %v890_v3 = vcombine.low %v307_v1, %v308_v2  ;;  %v745_v4 = vcombine.high %v307_v1, %v308_v2  ;;  %v465_v8 = vunpack.c.l.bf16 %v307_v1  ;;  %v466_v9 = vunpack.c.h.bf16 %v307_v1  ;;  %v799_v36 = vld [vmem:[%s1017_s1] ss:$8 sps:$4 sm:$0xff]  }
  0x10   : > { %v467_v10 = vunpack.c.l.bf16 %v308_v2  ;;  %v468_v11 = vunpack.c.h.bf16 %v308_v2  ;;  %v749_v53 = vld [vmem:[%s1023_s7] ss:$0 sm:$0xff] }
  0x11   : > { %345 = vrot.lane.b32.xlu1 %v890_v3, %s817_s11  ;;  %352 = vrot.lane.b32.xlu0 %v890_v3, %s818_s12  ;;  %v787_v14 = vpack.i.bf16 %v466_v9, %v465_v8  ;;  %v591_v5 = vld [vmem:[%s1021_s5] sm:$0xff]  ;;  %v620_v9 = vld [vmem:[%s1022_s6 + $0x8] sm:$0xff] }
  0x12   : > { %v792_v15 = vpack.i.bf16 %v468_v11, %v467_v10  ;;  %v804_v8 = vld [vmem:[%s1020_s4 + $0x4] ss:$8 sps:$4 sm:$0xff]   ;;  %v622_v11 = vld [vmem:[%s1022_s6 + $0x18] sm:$0xff] }
  0x13   : > { %v619_v10 = vld [vmem:[%s1022_s6] sm:$0xff]  ;;  %754 = vmatprep.mubr.msk.bf16.mxu1 %vm377_vm0, %v804_v8 }
  0x15   : > { %347 = vrot.lane.b32.xlu1 %v745_v4, %s817_s11  ;;  %354 = vrot.lane.b32.xlu0 %v745_v4, %s818_s12 }
  0x19   : > { %340 = vrot.lane.b32.xlu1 %v745_v4, %s819_s13  ;;  %338 = vrot.lane.b32.xlu0 %v890_v3, %s819_s13 }
  0x1d   : > { %333 = vrot.lane.b32.xlu1 %v745_v4, %s820_s14  ;;  %331 = vrot.lane.b32.xlu0 %v890_v3, %s820_s14 }
  0x21   : > { %326 = vrot.lane.b32.xlu1 %v745_v4, %s821_s15  ;;  %324 = vrot.lane.b32.xlu0 %v890_v3, %s821_s15 }
  0x25   : > { %318 = vrot.lane.b32.xlu0 %v890_v3, %s822_s16  ;;  %315 = vrot.lane.b32.xlu1 %v890_v3, %s823_s17 }
  0x29   : > { %361 = vrot.lane.b32.xlu1 %v745_v4, %s824_s18  ;;  %359 = vrot.lane.b32.xlu0 %v890_v3, %s824_s18  ;;  %v592_v4 = vld [vmem:[%s1021_s5 + $0x8] sm:$0xff] }
  0x2d   : > { %431 = vperm.xlu1 %786, %v423_v6   ;;  %426 = vperm.xlu0 %785, %v422_v7   ;;  %v594_v6 = vld [vmem:[%s1021_s5 + $0x18] sm:$0xff]  ;;  %v593_v7 = vld [vmem:[%s1021_s5 + $0x10] sm:$0xff] }
  0x31   : > { %440 = vperm.xlu1 %786, %v436_v12   ;;  %445 = vperm.xlu0 %785, %v437_v13   ;;  %v621_v12 = vld [vmem:[%s1022_s6 + $0x10] sm:$0xff] }
  0x35   : > { %788 = vrot.lane.b32.xlu1 %v787_v14, %s820_s14  ;;  %793 = vrot.lane.b32.xlu0 %v792_v15, %s820_s14 }
  0x83   : > { %v346_v16 = vpop.permute.xlu1 %345  ;;  %v353_v17 = vpop.permute.xlu0 %352 }
  0x87   : > { %v348_v18 = vpop.permute.xlu1 %347  ;;  %v355_v19 = vpop.permute.xlu0 %354 }
  0x88   : > { %v357_v20 = vsel %vm356_vm1, %v353_v17, %v355_v19  ;;  %v350_v23 = vsel %vm349_vm2, %v346_v16, %v348_v18 }
  0x89   : > { %382 = vmatpush1.bf16.msra.mxu0 %v357_v20 }
  0x8a   : > { %383 = vmatprep.subr.bf16.mxu0 %v816_v0 }
  0x8b   : > { %v341_v21 = vpop.permute.xlu1 %340  ;;  %v339_v22 = vpop.permute.xlu0 %338 }
  0x8c   : > { %v343_v24 = vsel %vm342_vm3, %v339_v22, %v341_v21  ;;  %v802_v21 = vld [vmem:[%s1020_s4] ss:$8 sps:$4 sm:$0xff]   ;;  %v805_v22 = vld [vmem:[%s1020_s4 + $0x14] ss:$8 sps:$4 sm:$0xff]  }
  0x8d   : > { %384 = vmatpush1.bf16.msra.mxu0 %v350_v23  ;;  %v807_v23 = vld [vmem:[%s1020_s4 + $0x10] ss:$8 sps:$4 sm:$0xff]  }
  0x8e   : > { %385 = vmatprep.subr.bf16.mxu0 %v816_v0 }
  0x8f   : > { %v334_v25 = vpop.permute.xlu1 %333  ;;  %v332_v26 = vpop.permute.xlu0 %331 }
  0x90   : > { %v336_v27 = vsel %vm335_vm4, %v332_v26, %v334_v25 }
  0x91   : > { %386 = vmatpush1.bf16.msra.mxu0 %v343_v24 }
  0x92   : > { %387 = vmatprep.subr.bf16.mxu0 %v816_v0 }
  0x93   : > { %v327_v28 = vpop.permute.xlu1 %326  ;;  %v325_v29 = vpop.permute.xlu0 %324 }
  0x94   : > { %v329_v30 = vsel %vm328_vm5, %v325_v29, %v327_v28 }
  0x95   : > { %388 = vmatpush1.bf16.msra.mxu0 %v336_v27 }
  0x96   : > { %389 = vmatprep.subr.bf16.mxu0 %v816_v0 }
  0x97   : > { %v319_v31 = vpop.permute.xlu0 %318  ;;  %v316_v32 = vpop.permute.xlu1 %315 }
  0x99   : > { %390 = vmatpush1.bf16.msra.mxu0 %v329_v30 }
  0x9a   : > { %391 = vmatprep.subr.bf16.mxu0 %v816_v0 }
  0x9b   : > { %v362_v33 = vpop.permute.xlu1 %361  ;;  %v360_v34 = vpop.permute.xlu0 %359 }
  0x9c   : > { %v364_v35 = vsel %vm363_vm6, %v360_v34, %v362_v33 }
  0x9d   : > { %392 = vmatpush1.bf16.msra.mxu0 %v319_v31 }
  0x9e   : > { %393 = vmatprep.subr.bf16.mxu0 %v816_v0 }
  0xa1   : > { %394 = vmatpush1.bf16.msra.mxu0 %v316_v32 }
  0xa2   : > { %395 = vmatprep.subr.bf16.mxu0 %v816_v0 }
  0xa5   : > { %396 = vmatpush1.bf16.msra.mxu0 %v890_v3 }
  0xa6   : > { %411 = vmatprep.subr.bf16.mxu0 %v816_v0 }
  0xa8   : > { %v432_v37 = vpop.permute.xlu1 %431  ;;  %v427_v38 = vpop.permute.xlu0 %426 }
  0xa9   : > { %412 = vmatpush2.bf16.msra.mxu0 %v364_v35 }
  0xac   : > { %414 = vmatmul.mubr.bf16.vlgmr.msra.gmra.mxu0 %v799_v36  ;;  %v441_v39 = vpop.permute.xlu1 %440  ;;  %v446_v41 = vpop.permute.xlu0 %445 }
  0xb0   : > { %v789_v45 = vpop.permute.xlu1 %788  ;;  %v794_v47 = vpop.permute.xlu0 %793 }
  0xb1   : > { %v791_v50 = vunpack.i.h.bf16 %v789_v45  ;;  %v790_v51 = vunpack.i.l.bf16 %v789_v45  ;;  %v796_v56 = vunpack.i.h.bf16 %v794_v47  ;;  %v795_v57 = vunpack.i.l.bf16 %v794_v47 }
  0xb3   : > { %v482_v61 = vsel %vm335_vm4, %v790_v51, %v791_v50  ;;  %v483_v62 = vsel %vm335_vm4, %v795_v57, %v796_v56 }
 0x16c   : > { %v415_v40 = vpop.f32.mrf.mxu0 }
 0x16d   : > { %v434_v42 = vmul.f32 %v427_v38, %v415_v40 }
 0x16e   : > { %v417_v43 = vpop.f32.mrf.mxu0 }
 0x16f   : > { %v448_v44 = vadd.f32 %v441_v39, %v434_v42 }
 0x170   : > { %v418_v46 = vpop.f32.mrf.mxu0 }
 0x171   : > { %vm450_vm7 = vcmp.gt.f32.partialorder %v448_v44, 0.0  ;;  %v452_v48 = vmul.f32 0.01, %v448_v44  ;;  %v435_v49 = vmul.f32 %v432_v37, %v418_v46 }
 0x172   : > { %v420_v52 = vpop.f32.mrf.mxu0 }
 0x173   : > { %v454_v54 = vsel %vm450_vm7, %v448_v44, %v452_v48  ;;  %v449_v55 = vadd.f32 %v446_v41, %v435_v49 }
 0x174   : > { %v463_v59 = vmul.f32 %v749_v53, %v454_v54 }
 0x175   : > { %vm451_vm8 = vcmp.gt.f32.partialorder %v449_v55, 0.0  ;;  %v453_v58 = vmul.f32 0.01, %v449_v55 }
 0x176   : > { %v486_v1 = vadd.f32 %v482_v61, %v463_v59 }
 0x177   : > { %v455_v60 = vsel %vm451_vm8, %v449_v55, %v453_v58 }
 0x178   : > { %v464_v63 = vmul.f32 %v749_v53, %v455_v60 }
 0x17a   : > { %v487_v2 = vadd.f32 %v483_v62, %v464_v63 }
 0x17c   : > { %v488_v3 = vpack.c.bf16 %v487_v2, %v486_v1 }
 0x17e   : > { %505 = vrot.lane.b32.xlu0 %v488_v3, %s817_s11  ;;  %508 = vrot.lane.b32.xlu1 %v488_v3, %s818_s12 }
 0x182   : > { %499 = vrot.lane.b32.xlu0 %v488_v3, %s820_s14  ;;  %502 = vrot.lane.b32.xlu1 %v488_v3, %s819_s13 }
 0x186   : > { %493 = vrot.lane.b32.xlu0 %v488_v3, %s822_s16  ;;  %496 = vrot.lane.b32.xlu1 %v488_v3, %s821_s15  ;;  %s305_s15 = scalar_lea.vmem %s1024_s8, %s762_s29 }
 0x18a   : > { %511 = vrot.lane.b32.xlu0 %v488_v3, %s824_s18  ;;  %490 = vrot.lane.b32.xlu1 %v488_v3, %s823_s17 }
 0x18e   : > { %602 = vperm.xlu0 %785, %v592_v4   ;;  %597 = vperm.xlu1 %786, %v591_v5  }
 0x192   : > { %612 = vperm.xlu0 %785, %v594_v6   ;;  %607 = vperm.xlu1 %786, %v593_v7  }
 0x196   : > { %630 = vperm.xlu0 %785, %v620_v9   ;;  %625 = vperm.xlu1 %786, %v619_v10  }
 0x19a   : > { %640 = vperm.xlu0 %785, %v622_v11   ;;  %635 = vperm.xlu1 %786, %v621_v12  }
 0x1f0   : > { %v509_v13 = vpop.permute.xlu1 %508  ;;  %v506_v14 = vpop.permute.xlu0 %505 }
 0x1f1   : > { %543 = vmatpush1.bf16.msra.mxu1 %v509_v13 }
 0x1f2   : > { %544 = vmatprep.subr.bf16.mxu1 %v816_v0 }
 0x1f4   : > { %v503_v15 = vpop.permute.xlu1 %502  ;;  %v500_v16 = vpop.permute.xlu0 %499 }
 0x1f5   : > { %545 = vmatpush1.bf16.msra.mxu1 %v506_v14 }
 0x1f6   : > { %546 = vmatprep.subr.bf16.mxu1 %v816_v0 }
 0x1f8   : > { %v497_v17 = vpop.permute.xlu1 %496  ;;  %v494_v18 = vpop.permute.xlu0 %493 }
 0x1f9   : > { %547 = vmatpush1.bf16.msra.mxu1 %v503_v15 }
 0x1fa   : > { %548 = vmatprep.subr.bf16.mxu1 %v816_v0 }
 0x1fc   : > { %v491_v19 = vpop.permute.xlu1 %490  ;;  %v512_v20 = vpop.permute.xlu0 %511 }
 0x1fd   : > { %549 = vmatpush1.bf16.msra.mxu1 %v500_v16 }
 0x1fe   : > { %550 = vmatprep.subr.bf16.mxu1 %v816_v0 }
 0x201   : > { %551 = vmatpush1.bf16.msra.mxu1 %v497_v17 }
 0x202   : > { %552 = vmatprep.subr.bf16.mxu1 %v816_v0 }
 0x205   : > { %553 = vmatpush1.bf16.msra.mxu1 %v494_v18 }
 0x206   : > { %554 = vmatprep.subr.bf16.mxu1 %v816_v0 }
 0x209   : > { %555 = vmatpush1.bf16.msra.mxu1 %v491_v19  ;;  %v603_v24 = vpop.permute.xlu0 %602 }
 0x20a   : > { %556 = vmatprep.subr.bf16.mxu1 %v816_v0 }
 0x20d   : > { %557 = vmatpush1.bf16.msra.mxu1 %v488_v3  ;;  %v613_v26 = vpop.permute.xlu0 %612 }
 0x20e   : > { %572 = vmatprep.subr.bf16.mxu1 %v816_v0  ;;  %v598_v0 = vpop.permute.xlu1 %597 }
 0x211   : > { %573 = vmatpush2.bf16.msra.mxu1 %v512_v20  ;;  %v631_v35 = vpop.permute.xlu0 %630 }
 0x212   : > { %v608_v25 = vpop.permute.xlu1 %607 }
 0x214   : > { %575 = vmatmul.mubr.bf16.vlgmr.msra.gmra.mxu1 %v802_v21 }
 0x215   : > { %755 = vmatprep.mubr.msk.bf16.mxu1 %vm377_vm0, %v805_v22  ;;  %v641_v51 = vpop.permute.xlu0 %640 }
 0x216   : > { %v626_v29 = vpop.permute.xlu1 %625 }
 0x21a   : > { %v636_v43 = vpop.permute.xlu1 %635 }
 0x21c   : > { %583 = vmatmul.mubr.bf16.gmra.mxu1 %v807_v23 }
 0x2d4   : > { %v576_v27 = vpop.f32.mrf.mxu1 }
 0x2d5   : > { %v615_v28 = vmul.f32 %v598_v0, %v576_v27 }
 0x2d6   : > { %v578_v30 = vpop.f32.mrf.mxu1 }
 0x2d7   : > { %v643_v31 = vadd.f32 %v626_v29, %v615_v28 }
 0x2d8   : > { %v579_v32 = vpop.f32.mrf.mxu1 }
 0x2d9   : > { %vm647_vm9 = vcmp.gt.f32.partialorder %v643_v31, 0.0  ;;  %v651_v33 = vmul.f32 0.01, %v643_v31  ;;  %v616_v34 = vmul.f32 %v603_v24, %v579_v32 }
 0x2da   : > { %v581_v36 = vpop.f32.mrf.mxu1 }
 0x2db   : > { %v655_v37 = vsel %vm647_vm9, %v643_v31, %v651_v33  ;;  %v644_v38 = vadd.f32 %v631_v35, %v616_v34 }
 0x2dc   : > { %v764_v39 = vpack.c.bf16 %v655_v37, %v655_v37  ;;  %v584_v40 = vpop.f32.mrf.mxu1 }
 0x2dd   : > { %vm648_vm11 = vcmp.gt.f32.partialorder %v644_v38, 0.0  ;;  %v652_v41 = vmul.f32 0.01, %v644_v38  ;;  %v617_v42 = vmul.f32 %v608_v25, %v584_v40 }
 0x2de   : > { %676 = vst.msk [vmem:[%s305_s15] sm:$0xf] %vm675_vm10, %v764_v39  ;;  %v586_v44 = vpop.f32.mrf.mxu1 }
 0x2df   : > { %v656_v45 = vsel %vm648_vm11, %v644_v38, %v652_v41  ;;  %v645_v46 = vadd.f32 %v636_v43, %v617_v42 }
 0x2e0   : > { %v765_v47 = vpack.c.bf16 %v656_v45, %v656_v45  ;;  %v587_v48 = vpop.f32.mrf.mxu1 }
 0x2e1   : > { %vm649_vm12 = vcmp.gt.f32.partialorder %v645_v46, 0.0  ;;  %v653_v49 = vmul.f32 0.01, %v645_v46  ;;  %v618_v50 = vmul.f32 %v613_v26, %v587_v48 }
 0x2e2   : > { %677 = vst.msk [vmem:[%s305_s15 + $0x4] sm:$0xf] %vm675_vm10, %v765_v47  ;;  %v589_v52 = vpop.f32.mrf.mxu1 }
 0x2e3   : > { %v657_v53 = vsel %vm649_vm12, %v645_v46, %v653_v49  ;;  %v646_v54 = vadd.f32 %v641_v51, %v618_v50 }
 0x2e4   : > { %v766_v55 = vpack.c.bf16 %v657_v53, %v657_v53 }
 0x2e5   : > { %vm650_vm13 = vcmp.gt.f32.partialorder %v646_v54, 0.0  ;;  %v654_v56 = vmul.f32 0.01, %v646_v54 }
 0x2e6   : > { %678 = vst.msk [vmem:[%s305_s15 + $0x8] sm:$0xf] %vm675_vm10, %v766_v55 }
 0x2e7   : > { %v658_v57 = vsel %vm650_vm13, %v646_v54, %v654_v56 }
 0x2e8   : > { %v767_v58 = vpack.c.bf16 %v658_v57, %v658_v57 }
 0x2ea   : > { %679 = vst.msk [vmem:[%s305_s15 + $0xc] sm:$0xf] %vm675_vm10, %v767_v58 }
 0x2eb PF: > { %s18_s27 = sadd.s32 1, %s814_s27  }
 0x2ec   : > { %p15_p4 = scmp.ge.s32.totalorder %s18_s27, 4  }
 0x2ee   :  { %17 = sbr.rel (!%p15_p4) target bundleno = 1 (0x1), region = 82 }

// kernel: cnn_decoder_forward.5
= control target key start
LH: loop header
LB: loop body
LE: loop exit
PB: predicated region body
PF: predicated region fallthrough
CT: control target
= control target key end

     0   :  { %s1136_s27 = smov 0   ;;  %s1391_s0 = inlined_call_operand.vmem [shape: bf16[2,8,400], index: 0, kind: input, shape index: {}]   ;;  %s1392_s1 = inlined_call_operand.vmem [shape: bf16[8,72], index: 1, kind: input, shape index: {}]   ;;  %s1393_s2 = inlined_call_operand.vmem [shape: f32[8,1], index: 2, kind: input, shape index: {}]   ;;  %s1394_s3 = inlined_call_operand.vmem [shape: f32[8,1], index: 3, kind: input, shape index: {}]   ;;  %s1395_s4 = inlined_call_operand.vmem [shape: bf16[16,72], index: 4, kind: input, shape index: {}]   ;;  %s1396_s5 = inlined_call_operand.vmem [shape: f32[16,1], index: 5, kind: input, shape index: {}]   ;;  %s1397_s6 = inlined_call_operand.vmem [shape: f32[16,1], index: 6, kind: input, shape index: {}]   ;;  %s1398_s7 = inlined_call_operand.vmem [shape: f32[1,362], index: 7, kind: input, shape index: {}]   ;;  %s1399_s8 = inlined_call_operand.vmem [shape: bf16[2,16,324], index: 8, kind: output, shape index: {}]  }
   0x1 LB: > { %s970_s28 = sadd.s32 4294967295, %s1078_s27   ;;  %p974_p0 = scmp.ge.s32.totalorder %s1078_s27, 1  ;;  %s1078_s27 = sphi %s1136_s27, %s18_s27  }
   0x2   : > { %p262_p1 = scmp.lt.s32.totalorder %s1078_s27, 3 }
   0x4   : > { %p263_p2 = pnand %p974_p0, %p262_p1 }
   0x5   : > { %p296_p3 = scmp.lt.s32.totalorder (!%p263_p2), %s970_s28, 1  ;;  %s1081_s11 = smov (!%p263_p2), 90  }
   0x6   : > { %266 = sbr.rel (%p263_p2) target bundleno = 769 (0x301), region = 52  ;;  %s1082_s12 = smov (!%p263_p2), 92  }
   0x7   : > { %s1083_s13 = smov (!%p263_p2), 91   ;;  %s1084_s14 = smov (!%p263_p2), 109  }
   0x8   : > { %s1085_s15 = smov (!%p263_p2), 108   ;;  %s1086_s16 = smov (!%p263_p2), 126  }
   0x9   : > { %s1087_s17 = smov (!%p263_p2), 110   ;;  %s1090_s18 = smov (!%p263_p2), 127  }
   0xb   : > { %v1080_v0 = vmov 0.0   ;;  %s1401_s28 = smov (!%p296_p3, %s970_s28), 1  ;;  %vm1088_vm0 = vmmov 0   ;;  %v1089_v7 = vmov 0   ;;  %v544_v10 = vld [vmem:[%s1393_s2] sm:$0xff]  ;;  %vm396_vm1 = vcmask 736256  }
   0xc   : > { %1012 = vmatprep.subr.bf16.mxu1 %v1080_v0  ;;  %s995_s29 = sshll.u32 %s1401_s28, 4  ;;  %1022 = vmatprep.mubr.msk.bf16.mxu1 %vm1088_vm0, %v1080_v0  ;;  %v553_v12 = vld [vmem:[%s1394_s3] sm:$0xff]  ;;  %vm400_vm2 = vcmask 1043456   ;;  %vm372_vm3 = vcmask 752640   ;;  %vm384_vm4 = vcmask 744448   ;;  %vm350_vm5 = vcmask 891904  }
   0xd   : > { %s300_s10 = scalar_lea.vmem %s1391_s0, %s995_s29  ;;  %495 = vmatprep.mubr.bf16.mxu0 %v1089_v7  ;;  %1060 = vset.pattern.permute.xlu1 %v1089_v7  ;;  %vm359_vm6 = vcmask 883712   ;;  %vm332_vm7 = vcmask 1031168   ;;  %vm341_vm8 = vcmask 900096   ;;  %vm323_vm9 = vcmask 1039360  }
   0xe   : > { %v308_v1 = vld [vmem:[%s300_s10 + $0x8] sm:$0xff]  ;;  %v307_v2 = vld [vmem:[%s300_s10] sm:$0xff]  ;;  %1061 = vset.pattern.permute.xlu0 %v1089_v7  ;;  %vm450_vm10 = vcmask 588800   ;;  %vm911_vm15 = vcmask 551936  }
   0xf   : > { %v1151_v3 = vcombine.low %v308_v1, %v308_v1  ;;  %v1153_v4 = vcombine.low %v307_v2, %v307_v2  ;;  %v981_v5 = vcombine.high %v308_v1, %v308_v1  ;;  %v1159_v6 = vcombine.high %v307_v2, %v307_v2 }
  0x10   : > { %v591_v8 = vunpack.c.l.bf16 %v307_v2  ;;  %v592_v9 = vunpack.c.h.bf16 %v307_v2  ;;  %v593_v13 = vunpack.c.l.bf16 %v308_v1 }
  0x11   : > { %392 = vrot.lane.b32.xlu1 %v1151_v3, %s1081_s11  ;;  %388 = vrot.lane.b32.xlu0 %v1153_v4, %s1081_s11 }
  0x12   : > { %v1062_v11 = vpack.i.bf16 %v592_v9, %v591_v8 }
  0x15   : > { %394 = vrot.lane.b32.xlu1 %v981_v5, %s1081_s11  ;;  %390 = vrot.lane.b32.xlu0 %v1159_v6, %s1081_s11 }
  0x19   : > { %368 = vrot.lane.b32.xlu1 %v1151_v3, %s1082_s12  ;;  %366 = vrot.lane.b32.xlu0 %v1159_v6, %s1082_s12 }
  0x1d   : > { %380 = vrot.lane.b32.xlu1 %v1151_v3, %s1083_s13  ;;  %378 = vrot.lane.b32.xlu0 %v1159_v6, %s1083_s13 }
  0x21   : > { %376 = vrot.lane.b32.xlu1 %v1153_v4, %s1083_s13  ;;  %364 = vrot.lane.b32.xlu0 %v1153_v4, %s1082_s12 }
  0x25   : > { %382 = vrot.lane.b32.xlu1 %v981_v5, %s1083_s13  ;;  %370 = vrot.lane.b32.xlu0 %v981_v5, %s1082_s12 }
  0x29   : > { %348 = vrot.lane.b32.xlu1 %v1151_v3, %s1084_s14  ;;  %346 = vrot.lane.b32.xlu0 %v1159_v6, %s1084_s14 }
  0x2d   : > { %357 = vrot.lane.b32.xlu1 %v1151_v3, %s1085_s15  ;;  %355 = vrot.lane.b32.xlu0 %v1159_v6, %s1085_s15 }
  0x31   : > { %353 = vrot.lane.b32.xlu1 %v1153_v4, %s1085_s15  ;;  %344 = vrot.lane.b32.xlu0 %v1153_v4, %s1084_s14 }
  0x35   : > { %330 = vrot.lane.b32.xlu1 %v1151_v3, %s1086_s16  ;;  %328 = vrot.lane.b32.xlu0 %v1159_v6, %s1086_s16 }
  0x39   : > { %339 = vrot.lane.b32.xlu1 %v1151_v3, %s1087_s17  ;;  %337 = vrot.lane.b32.xlu0 %v1159_v6, %s1087_s17 }
  0x3d   : > { %335 = vrot.lane.b32.xlu1 %v1153_v4, %s1087_s17  ;;  %326 = vrot.lane.b32.xlu0 %v1153_v4, %s1086_s16 }
  0x41   : > { %321 = vrot.lane.b32.xlu1 %v1151_v3, %s1090_s18  ;;  %319 = vrot.lane.b32.xlu0 %v1159_v6, %s1090_s18 }
  0x45   : > { %317 = vrot.lane.b32.xlu0 %v1153_v4, %s1090_s18  ;;  %547 = vperm.xlu1 %1060, %v544_v10  }
  0x49   : > { %556 = vperm.xlu0 %1061, %v553_v12   ;;  %1063 = vrot.lane.b32.xlu1 %v1062_v11, %s1084_s14  ;;  %v449_v12 = vld [vmem:[%s1392_s1] sm:$0xf] }
  0x4d   : > { %601 = vrot.lane.b32.xlu1 %v593_v13, %s1084_s14 }
  0x83   : > { %v393_v14 = vpop.permute.xlu1 %392  ;;  %v389_v15 = vpop.permute.xlu0 %388 }
  0x87   : > { %v395_v16 = vpop.permute.xlu1 %394  ;;  %v391_v17 = vpop.permute.xlu0 %390 }
  0x88   : > { %v398_v18 = vsel %vm396_vm1, %v391_v17, %v393_v14  ;;  %v397_v19 = vsel %vm396_vm1, %v389_v15, %v391_v17  ;;  %v399_v20 = vsel %vm396_vm1, %v393_v14, %v395_v16 }
  0x89   : > { %982 = vmatprep.subr.msk.bf16.mxu0 %vm400_vm2, %v398_v18  ;;  %v455_v21 = vsel %vm400_vm2, %v397_v19, 0  ;;  %v461_v22 = vsel %vm400_vm2, %v399_v20, 0 }
  0x8a   : > { %470 = vmatpush1.bf16.msra.mxu0 %v455_v21  ;;  %1013 = vmatpush3.bf16.msra.mxu1 %v461_v22 }
  0x8b   : > { %v369_v23 = vpop.permute.xlu1 %368  ;;  %v367_v24 = vpop.permute.xlu0 %366  ;;  %1014 = vmatprep.subr.bf16.mxu1 %v1080_v0 }
  0x8c   : > { %v374_v27 = vsel %vm372_vm3, %v367_v24, %v369_v23 }
  0x8f   : > { %v381_v25 = vpop.permute.xlu1 %380  ;;  %v379_v26 = vpop.permute.xlu0 %378 }
  0x90   : > { %v386_v28 = vsel %vm384_vm4, %v379_v26, %v381_v25 }
  0x91   : > { %v443_v29 = vsel %vm400_vm2, %v374_v27, %v386_v28  ;;  %v571_v27 = vld [vmem:[%s1398_s7] sm:$0x7] }
  0x92   : > { %471 = vmatprep.subr.bf16.mxu0 %v443_v29 }
  0x93   : > { %v377_v30 = vpop.permute.xlu1 %376  ;;  %v365_v31 = vpop.permute.xlu0 %364 }
  0x94   : > { %v385_v32 = vsel %vm384_vm4, %v377_v30, %v379_v26  ;;  %v373_v33 = vsel %vm372_vm3, %v365_v31, %v367_v24 }
  0x95   : > { %v439_v34 = vsel %vm400_vm2, %v373_v33, %v385_v32 }
  0x96   : > { %472 = vmatpush1.bf16.msra.mxu0 %v439_v34 }
  0x97   : > { %v383_v35 = vpop.permute.xlu1 %382  ;;  %v371_v36 = vpop.permute.xlu0 %370 }
  0x98   : > { %v387_v37 = vsel %vm384_vm4, %v381_v25, %v383_v35  ;;  %v375_v38 = vsel %vm372_vm3, %v369_v23, %v371_v36 }
  0x99   : > { %v447_v39 = vsel %vm400_vm2, %v375_v38, %v387_v37 }
  0x9a   : > { %1015 = vmatpush3.bf16.msra.mxu1 %v447_v39 }
  0x9b   : > { %v349_v40 = vpop.permute.xlu1 %348  ;;  %v347_v41 = vpop.permute.xlu0 %346  ;;  %1016 = vmatprep.subr.bf16.mxu1 %v1080_v0 }
  0x9c   : > { %v352_v44 = vsel %vm350_vm5, %v347_v41, %v349_v40 }
  0x9f   : > { %v358_v42 = vpop.permute.xlu1 %357  ;;  %v356_v43 = vpop.permute.xlu0 %355 }
  0xa0   : > { %v361_v45 = vsel %vm359_vm6, %v356_v43, %v358_v42  ;;  %v435_v46 = vsel %vm400_vm2, %v349_v40, %v358_v42 }
  0xa1   : > { %1017 = vmatpush3.bf16.msra.mxu1 %v435_v46  ;;  %v431_v47 = vsel %vm400_vm2, %v352_v44, %v361_v45 }
  0xa2   : > { %473 = vmatprep.subr.bf16.mxu0 %v431_v47  ;;  %1018 = vmatprep.subr.bf16.mxu1 %v1080_v0 }
  0xa3   : > { %v354_v48 = vpop.permute.xlu1 %353  ;;  %v345_v49 = vpop.permute.xlu0 %344 }
  0xa4   : > { %v360_v50 = vsel %vm359_vm6, %v354_v48, %v356_v43  ;;  %v351_v51 = vsel %vm350_vm5, %v345_v49, %v347_v41 }
  0xa5   : > { %v427_v52 = vsel %vm400_vm2, %v351_v51, %v360_v50 }
  0xa6   : > { %474 = vmatpush1.bf16.msra.mxu0 %v427_v52 }
  0xa7   : > { %v331_v53 = vpop.permute.xlu1 %330  ;;  %v329_v54 = vpop.permute.xlu0 %328 }
  0xa8   : > { %v334_v57 = vsel %vm332_vm7, %v329_v54, %v331_v53 }
  0xab   : > { %v340_v55 = vpop.permute.xlu1 %339  ;;  %v338_v56 = vpop.permute.xlu0 %337 }
  0xac   : > { %v343_v58 = vsel %vm341_vm8, %v338_v56, %v340_v55  ;;  %v423_v59 = vsel %vm400_vm2, %v331_v53, %v340_v55 }
  0xad   : > { %1019 = vmatpush3.bf16.msra.mxu1 %v423_v59  ;;  %v419_v60 = vsel %vm400_vm2, %v334_v57, %v343_v58 }
  0xae   : > { %475 = vmatprep.subr.bf16.mxu0 %v419_v60  ;;  %1020 = vmatprep.subr.bf16.mxu1 %v1080_v0 }
  0xaf   : > { %v336_v61 = vpop.permute.xlu1 %335  ;;  %v327_v62 = vpop.permute.xlu0 %326 }
  0xb0   : > { %v342_v63 = vsel %vm341_vm8, %v336_v61, %v338_v56  ;;  %v333_v1 = vsel %vm332_vm7, %v327_v62, %v329_v54  ;;  %v837_v61 = vld [vmem:[%s1396_s5 + $0x8] sm:$0xff]  ;;  %v836_v62 = vld [vmem:[%s1396_s5] sm:$0xff] }
  0xb1   : > { %v415_v2 = vsel %vm400_vm2, %v333_v1, %v342_v63  ;;  %v855_v63 = vld [vmem:[%s1397_s6 + $0x8] sm:$0xff]  ;;  %v854_v1 = vld [vmem:[%s1397_s6] sm:$0xff] }
  0xb2   : > { %476 = vmatpush1.bf16.msra.mxu0 %v415_v2 }
  0xb3   : > { %v322_v5 = vpop.permute.xlu1 %321  ;;  %v320_v8 = vpop.permute.xlu0 %319 }
  0xb4   : > { %v325_v9 = vsel %vm323_vm9, %v320_v8, %v322_v5  ;;  %v411_v10 = vsel %vm400_vm2, %v1151_v3, %v322_v5 }
  0xb5   : > { %v407_v11 = vsel %vm400_vm2, %v1159_v6, %v325_v9  ;;  %1021 = vmatpush3.bf16.msra.mxu1 %v411_v10  ;;  %v573_v6 = vlaneseq }
  0xb6   : > { %477 = vmatprep.subr.bf16.mxu0 %v407_v11  ;;  %1026 = vmatprep.subr.bf16.mxu1 %v1080_v0 }
  0xb7   : > { %v318_v13 = vpop.permute.xlu0 %317  ;;  %v574_v19 = vshrl.u32 %v573_v6, 7 }
  0xb8   : > { %v324_v14 = vsel %vm323_vm9, %v318_v13, %v320_v8  ;;  %1023 = vmatmul.mubr.msk.bf16.vlgmr.msra.gmra.mxu1 %vm450_vm10, %v449_v12 }
  0xb9   : > { %v403_v3 = vsel %vm400_vm2, %v1153_v4, %v324_v14  ;;  %1036 = vmatprep.mubr.msk.bf16.mxu1 %vm1088_vm0, %v1080_v0  ;;  %v575_v24 = vsub.s32 0, %v574_v19  ;;  %v583_v4 = vsub.s32 2, %v574_v19  ;;  %v579_v44 = vsub.s32 1, %v574_v19 }
  0xba   : > { %478 = vmatpush1.bf16.msra.mxu0 %v403_v3 }
  0xbb   : > { %v576_v34 = vrot.slane %v571_v27, %v575_v24  ;;  %v584_v36 = vrot.slane %v571_v27, %v583_v4  ;;  %v580_v50 = vrot.slane %v571_v27, %v579_v44 }
  0xbd   : > { %983 = vmatmul.mubr.msk.bf16.vlgmr.msra.gmra.mxu0 %vm450_vm10, %v449_v12 }
  0xbe   : > { %784 = vmatprep.mubr.bf16.mxu0 %v1089_v7 }
  0xc0   : > { %v548_v15 = vpop.permute.xlu1 %547 }
  0xc4   : > { %v557_v17 = vpop.permute.xlu0 %556  ;;  %v1064_v29 = vpop.permute.xlu1 %1063 }
  0xc5   : > { %v1066_v32 = vunpack.i.h.bf16 %v1064_v29  ;;  %v1065_v33 = vunpack.i.l.bf16 %v1064_v29 }
  0xc7   : > { %v604_v42 = vsel %vm350_vm5, %v1065_v33, %v1066_v32 }
  0xc8   : > { %v602_v47 = vpop.permute.xlu1 %601 }
  0xc9   : > { %v605_v55 = vsel %vm350_vm5, %v1066_v32, %v602_v47 }
 0x178   : > { %v538_v16 = vpop.f32.mrf.mxu1 }
 0x179   : > { %v552_v18 = vmul.f32 %v548_v15, %v538_v16 }
 0x17a   : > { %v1024_v20 = vpop.f32.mrf.mxu1 }
 0x17b   : > { %v561_v21 = vadd.f32 %v557_v17, %v552_v18 }
 0x17c   : > { %v541_v22 = vpop.f32.mrf.mxu1 }
 0x17d   : > { %v497_v23 = vpop.f32.mrf.mxu0  ;;  %v567_v26 = vmul.f32 0.01, %v561_v21  ;;  %vm564_vm11 = vcmp.gt.f32.partialorder %v561_v21, 0.0 }
 0x17e   : > { %v550_v25 = vmul.f32 %v548_v15, %v497_v23  ;;  %v1025_v28 = vpop.f32.mrf.mxu1 }
 0x17f   : > { %v499_v7 = vpop.f32.mrf.mxu0  ;;  %v570_v39 = vsel %vm564_vm11, %v561_v21, %v567_v26 }
 0x180   : > { %v559_v30 = vadd.f32 %v557_v17, %v550_v25  ;;  %v551_v31 = vmul.f32 %v548_v15, %v499_v7  ;;  %v590_v45 = vmul.f32 %v584_v36, %v570_v39 }
 0x181   : > { %v501_v35 = vpop.f32.mrf.mxu0 }
 0x182   : > { %vm562_vm12 = vcmp.gt.f32.partialorder %v559_v30, 0.0  ;;  %v565_v37 = vmul.f32 0.01, %v559_v30  ;;  %v560_v38 = vadd.f32 %v557_v17, %v551_v31  ;;  %v611_v51 = vadd.f32 %v602_v47, %v590_v45 }
 0x183   : > { %v502_v40 = vpop.f32.mrf.mxu0 }
 0x184   : > { %v568_v41 = vsel %vm562_vm12, %v559_v30, %v565_v37  ;;  %v566_v46 = vmul.f32 0.01, %v560_v38  ;;  %vm563_vm13 = vcmp.gt.f32.partialorder %v560_v38, 0.0  ;;  %v1281_v54 = vpack.c.bf16 %v611_v51, %v611_v51 }
 0x185   : > { %v588_v43 = vmul.f32 %v576_v34, %v568_v41 }
 0x186   : > { %v569_v52 = vsel %vm563_vm13, %v560_v38, %v566_v46  ;;  %v620_v58 = vrot.slane %v1281_v54, 4 }
 0x187   : > { %v609_v48 = vadd.f32 %v604_v42, %v588_v43  ;;  %v589_v53 = vmul.f32 %v580_v50, %v569_v52 }
 0x189   : > { %v1275_v49 = vpack.c.bf16 %v609_v48, %v609_v48  ;;  %v610_v56 = vadd.f32 %v605_v55, %v589_v53 }
 0x18b   : > { %661 = vrot.lane.b32.xlu1 %v1275_v49, %s1082_s12  ;;  %677 = vrot.lane.b32.xlu0 %v1275_v49, %s1081_s11  ;;  %v1292_v57 = vpack.c.bf16 %v610_v56, %v610_v56  ;;  %v618_v59 = vrot.slane %v1275_v49, 4 }
 0x18d   : > { %v619_v60 = vrot.slane %v1292_v57, 4 }
 0x18f   : > { %645 = vrot.lane.b32.xlu1 %v1275_v49, %s1084_s14  ;;  %681 = vrot.lane.b32.xlu0 %v1281_v54, %s1081_s11 }
 0x193   : > { %629 = vrot.lane.b32.xlu1 %v1275_v49, %s1086_s16  ;;  %665 = vrot.lane.b32.xlu0 %v1281_v54, %s1082_s12 }
 0x197   : > { %679 = vrot.lane.b32.xlu1 %v1292_v57, %s1081_s11  ;;  %649 = vrot.lane.b32.xlu0 %v1281_v54, %s1084_s14 }
 0x19b   : > { %663 = vrot.lane.b32.xlu1 %v1292_v57, %s1082_s12  ;;  %633 = vrot.lane.b32.xlu0 %v1281_v54, %s1086_s16 }
 0x19f   : > { %647 = vrot.lane.b32.xlu1 %v1292_v57, %s1084_s14  ;;  %673 = vrot.lane.b32.xlu0 %v620_v58, %s1083_s13 }
 0x1a3   : > { %631 = vrot.lane.b32.xlu1 %v1292_v57, %s1086_s16  ;;  %669 = vrot.lane.b32.xlu0 %v618_v59, %s1083_s13 }
 0x1a7   : > { %671 = vrot.lane.b32.xlu1 %v619_v60, %s1083_s13  ;;  %657 = vrot.lane.b32.xlu0 %v620_v58, %s1085_s15 }
 0x1ab   : > { %655 = vrot.lane.b32.xlu1 %v619_v60, %s1085_s15  ;;  %653 = vrot.lane.b32.xlu0 %v618_v59, %s1085_s15 }
 0x1af   : > { %639 = vrot.lane.b32.xlu1 %v619_v60, %s1087_s17  ;;  %641 = vrot.lane.b32.xlu0 %v620_v58, %s1087_s17 }
 0x1b3   : > { %623 = vrot.lane.b32.xlu1 %v619_v60, %s1090_s18  ;;  %637 = vrot.lane.b32.xlu0 %v618_v59, %s1087_s17  ;;  %s1040_s17 = smul.u32 24, %s1401_s28 }
 0x1b5   : > { %s1380_s20 = scalar_lea.vmem %s1399_s8, %s1040_s17 }
 0x1b7   : > { %621 = vrot.lane.b32.xlu1 %v618_v59, %s1090_s18  ;;  %625 = vrot.lane.b32.xlu0 %v620_v58, %s1090_s18 }
 0x1bb   : > { %845 = vperm.xlu1 %1060, %v837_v61   ;;  %840 = vperm.xlu0 %1061, %v836_v62  }
 0x1bf   : > { %863 = vperm.xlu1 %1060, %v855_v63   ;;  %858 = vperm.xlu0 %1061, %v854_v1  }
 0x1fd   : > { %v662_v2 = vpop.permute.xlu1 %661  ;;  %v678_v5 = vpop.permute.xlu0 %677 }
 0x201   : > { %v646_v8 = vpop.permute.xlu1 %645  ;;  %v682_v9 = vpop.permute.xlu0 %681 }
 0x202   : > { %v750_v10 = vsel %vm400_vm2, %v682_v9, 0 }
 0x203   : > { %1027 = vmatpush3.bf16.msra.mxu1 %v750_v10 }
 0x204   : > { %1028 = vmatprep.subr.bf16.mxu1 %v1080_v0 }
 0x205   : > { %v630_v11 = vpop.permute.xlu1 %629  ;;  %v666_v12 = vpop.permute.xlu0 %665 }
 0x209   : > { %v680_v13 = vpop.permute.xlu1 %679  ;;  %v650_v14 = vpop.permute.xlu0 %649 }
 0x20a   : > { %v683_v3 = vsel %vm396_vm1, %v678_v5, %v680_v13  ;;  %v684_v6 = vsel %vm396_vm1, %v680_v13, %v682_v9 }
 0x20b   : > { %v744_v15 = vsel %vm400_vm2, %v683_v3, 0  ;;  %986 = vmatprep.subr.msk.bf16.mxu0 %vm400_vm2, %v684_v6 }
 0x20c   : > { %759 = vmatpush1.bf16.msra.mxu0 %v744_v15 }
 0x20d   : > { %v664_v16 = vpop.permute.xlu1 %663  ;;  %v634_v17 = vpop.permute.xlu0 %633 }
 0x20e   : > { %v667_v23 = vsel %vm372_vm3, %v662_v2, %v664_v16  ;;  %v668_v25 = vsel %vm372_vm3, %v664_v16, %v666_v12 }
 0x211   : > { %v648_v18 = vpop.permute.xlu1 %647  ;;  %v674_v19 = vpop.permute.xlu0 %673 }
 0x212   : > { %v731_v20 = vsel %vm400_vm2, %v666_v12, %v674_v19  ;;  %v651_v32 = vsel %vm350_vm5, %v646_v8, %v648_v18  ;;  %v652_v33 = vsel %vm350_vm5, %v648_v18, %v650_v14 }
 0x213   : > { %1029 = vmatpush3.bf16.msra.mxu1 %v731_v20 }
 0x214   : > { %1030 = vmatprep.subr.bf16.mxu1 %v1080_v0 }
 0x215   : > { %v632_v21 = vpop.permute.xlu1 %631  ;;  %v670_v22 = vpop.permute.xlu0 %669 }
 0x216   : > { %v636_v40 = vsel %vm332_vm7, %v632_v21, %v634_v17  ;;  %v635_v46 = vsel %vm332_vm7, %v630_v11, %v632_v21 }
 0x219   : > { %v672_v24 = vpop.permute.xlu1 %671  ;;  %v658_v4 = vpop.permute.xlu0 %657 }
 0x21a   : > { %v675_v26 = vsel %vm384_vm4, %v670_v22, %v672_v24  ;;  %v676_v27 = vsel %vm384_vm4, %v672_v24, %v674_v19  ;;  %v719_v28 = vsel %vm400_vm2, %v650_v14, %v658_v4 }
 0x21b   : > { %1031 = vmatpush3.bf16.msra.mxu1 %v719_v28  ;;  %v727_v7 = vsel %vm400_vm2, %v668_v25, %v676_v27  ;;  %v723_v29 = vsel %vm400_vm2, %v667_v23, %v675_v26 }
 0x21c   : > { %760 = vmatprep.subr.bf16.mxu0 %v727_v7  ;;  %1032 = vmatprep.subr.bf16.mxu1 %v1080_v0 }
 0x21d   : > { %v656_v30 = vpop.permute.xlu1 %655  ;;  %761 = vmatpush1.bf16.msra.mxu0 %v723_v29  ;;  %v654_v31 = vpop.permute.xlu0 %653 }
 0x21e   : > { %v660_v34 = vsel %vm359_vm6, %v656_v30, %v658_v4  ;;  %v659_v35 = vsel %vm359_vm6, %v654_v31, %v656_v30 }
 0x21f   : > { %v715_v36 = vsel %vm400_vm2, %v652_v33, %v660_v34  ;;  %v711_v37 = vsel %vm400_vm2, %v651_v32, %v659_v35 }
 0x220   : > { %762 = vmatprep.subr.bf16.mxu0 %v715_v36 }
 0x221   : > { %v640_v38 = vpop.permute.xlu1 %639  ;;  %763 = vmatpush1.bf16.msra.mxu0 %v711_v37  ;;  %v642_v39 = vpop.permute.xlu0 %641 }
 0x222   : > { %v644_v41 = vsel %vm341_vm8, %v640_v38, %v642_v39  ;;  %v707_v42 = vsel %vm400_vm2, %v634_v17, %v642_v39 }
 0x223   : > { %1033 = vmatpush3.bf16.msra.mxu1 %v707_v42  ;;  %v703_v43 = vsel %vm400_vm2, %v636_v40, %v644_v41 }
 0x224   : > { %764 = vmatprep.subr.bf16.mxu0 %v703_v43  ;;  %1034 = vmatprep.subr.bf16.mxu1 %v1080_v0  ;;  %v1071_v0 = vld [vmem:[%s1395_s4] sm:$0xff]  }
 0x225   : > { %v624_v44 = vpop.permute.xlu1 %623  ;;  %v638_v45 = vpop.permute.xlu0 %637 }
 0x226   : > { %v643_v47 = vsel %vm341_vm8, %v638_v45, %v640_v38 }
 0x227   : > { %v699_v48 = vsel %vm400_vm2, %v635_v46, %v643_v47 }
 0x228   : > { %765 = vmatpush1.bf16.msra.mxu0 %v699_v48 }
 0x229   : > { %v622_v50 = vpop.permute.xlu1 %621  ;;  %v626_v51 = vpop.permute.xlu0 %625 }
 0x22a   : > { %v627_v52 = vsel %vm323_vm9, %v622_v50, %v624_v44  ;;  %v628_v53 = vsel %vm323_vm9, %v624_v44, %v626_v51  ;;  %v695_v55 = vsel %vm400_vm2, %v1281_v54, %v626_v51 }
 0x22b   : > { %1035 = vmatpush3.bf16.msra.mxu1 %v695_v55  ;;  %v691_v56 = vsel %vm400_vm2, %v1292_v57, %v628_v53  ;;  %v687_v58 = vsel %vm400_vm2, %v1275_v49, %v627_v52 }
 0x22c   : > { %766 = vmatprep.subr.bf16.mxu0 %v691_v56 }
 0x22d   : > { %767 = vmatpush1.bf16.msra.mxu0 %v687_v58 }
 0x22e   : > { %1037 = vmatmul.mubr.msk.bf16.vlgmr.msra.gmra.mxu1 %vm450_vm10, %v1071_v0 }
 0x230   : > { %987 = vmatmul.mubr.msk.bf16.vlgmr.msra.gmra.mxu0 %vm450_vm10, %v1071_v0 }
 0x236   : > { %v841_v59 = vpop.permute.xlu0 %840  ;;  %v846_v60 = vpop.permute.xlu1 %845 }
 0x23a   : > { %v859_v61 = vpop.permute.xlu0 %858  ;;  %v864_v14 = vpop.permute.xlu1 %863 }
 0x2ee   : > { %v829_v54 = vpop.f32.mrf.mxu1 }
 0x2ef   : > { %v850_v62 = vmul.f32 %v841_v59, %v829_v54 }
 0x2f0   : > { %v786_v63 = vpop.f32.mrf.mxu0  ;;  %v1038_v1 = vpop.f32.mrf.mxu1 }
 0x2f1   : > { %v868_v2 = vadd.f32 %v859_v61, %v850_v62  ;;  %v848_v5 = vmul.f32 %v841_v59, %v786_v63 }
 0x2f2   : > { %v788_v57 = vpop.f32.mrf.mxu0  ;;  %v832_v8 = vpop.f32.mrf.mxu1 }
 0x2f3   : > { %vm874_vm14 = vcmp.gt.f32.partialorder %v868_v2, 0.0  ;;  %v880_v49 = vmul.f32 0.01, %v868_v2  ;;  %v866_v9 = vadd.f32 %v859_v61, %v848_v5  ;;  %v849_v10 = vmul.f32 %v841_v59, %v788_v57 }
 0x2f4   : > { %v853_v11 = vmul.f32 %v846_v60, %v832_v8  ;;  %v790_v12 = vpop.f32.mrf.mxu0  ;;  %v1039_v13 = vpop.f32.mrf.mxu1 }
 0x2f5   : > { %v886_v3 = vsel %vm874_vm14, %v868_v2, %v880_v49  ;;  %v878_v6 = vmul.f32 0.01, %v866_v9  ;;  %v867_v15 = vadd.f32 %v859_v61, %v849_v10  ;;  %vm872_vm0 = vcmp.gt.f32.partialorder %v866_v9, 0.0 }
 0x2f6   : > { %v997_v16 = vpack.c.bf16 %v886_v3, %v886_v3  ;;  %v871_v17 = vadd.f32 %v864_v14, %v853_v11  ;;  %v851_v18 = vmul.f32 %v846_v60, %v790_v12  ;;  %v792_v19 = vpop.f32.mrf.mxu0 }
 0x2f7   : > { %vm873_vm1 = vcmp.gt.f32.partialorder %v867_v15, 0.0  ;;  %v879_v20 = vmul.f32 0.01, %v867_v15  ;;  %v852_v21 = vmul.f32 %v846_v60, %v792_v19  ;;  %v884_v24 = vsel %vm872_vm0, %v866_v9, %v878_v6 }
 0x2f8   : > { %912 = vst.msk [vmem:[%s1380_s20 + $0x8] sm:$0xf] %vm911_vm15, %v997_v16  ;;  %vm877_vm2 = vcmp.gt.f32.partialorder %v871_v17, 0.0  ;;  %v883_v22 = vmul.f32 0.01, %v871_v17  ;;  %v869_v23 = vadd.f32 %v864_v14, %v851_v18 }
 0x2f9   : > { %v885_v4 = vsel %vm873_vm1, %v867_v15, %v879_v20  ;;  %v870_v25 = vadd.f32 %v864_v14, %v852_v21 }
 0x2fa   : > { %v996_v26 = vpack.c.bf16 %v885_v4, %v884_v24  ;;  %v889_v27 = vsel %vm877_vm2, %v871_v17, %v883_v22  ;;  %vm875_vm3 = vcmp.gt.f32.partialorder %v869_v23, 0.0  ;;  %v881_v28 = vmul.f32 0.01, %v869_v23 }
 0x2fb   : > { %v999_v7 = vpack.c.bf16 %v889_v27, %v889_v27  ;;  %vm876_vm4 = vcmp.gt.f32.partialorder %v870_v25, 0.0  ;;  %v882_v29 = vmul.f32 0.01, %v870_v25 }
 0x2fc   : > { %910 = vst [vmem:[%s1380_s20] sm:$0xff] %v996_v26  ;;  %v887_v30 = vsel %vm875_vm3, %v869_v23, %v881_v28 }
 0x2fd   : > { %914 = vst.msk [vmem:[%s1380_s20 + $0x14] sm:$0xf] %vm911_vm15, %v999_v7  ;;  %v888_v31 = vsel %vm876_vm4, %v870_v25, %v882_v29 }
 0x2fe   : > { %v998_v32 = vpack.c.bf16 %v888_v31, %v887_v30 }
 0x300   : > { %913 = vst [vmem:[%s1380_s20 + $0xc] sm:$0xff] %v998_v32 }
 0x301 PF: > { %s18_s27 = sadd.s32 1, %s1078_s27  }
 0x302   : > { %p15_p4 = scmp.ge.s32.totalorder %s18_s27, 4  }
 0x304   :  { %17 = sbr.rel (!%p15_p4) target bundleno = 1 (0x1), region = 82 }

</bundles_post_ra>
